<compile_context>
chip_gen: v7x
topology: tpu7x:2x2x1
jax: 0.10.0
libtpu: 0.0.40
codegen_flags: <defaults>
</compile_context>

<pallas_src>
import math
from functools import partial

import jax
import jax.numpy as jnp
from jax import lax
from jax.experimental import pallas as pl
from jax.experimental.pallas import tpu as pltpu


def _paths_loss_kernel(xs_ref, ys_ref, s_ref, out_ref,
                       K_ref, u_ref, v_ref, a_ref, b_ref, kt_ref, done_ref,
                       alldone_ref, stab_ref, *,
                       G, N, d, eps, logZ, n_iter, atol, rtol, thresh):
    """Balanced SinkhornLoss.forward for G consecutive time pairs at once."""
    inv_eps = 1.0 / eps
    inv_n = 1.0 / N
    logN = math.log(N)
    logZ2 = logZ + 2.0 * logN                  # folds x_w * y_w = 1/N^2 into the exponent

    xs = xs_ref[...]                           # (G, N, d)  x[t]
    ys = ys_ref[...]                           # (G, N, d)  x[t+1]
    inv2s2 = s_ref[...]                        # (G, 1, 1)  1 / (2 sf^2)

    ones_d = jnp.ones((G, 1, d), jnp.float32)
    x2 = jnp.sum(xs * xs, axis=2, keepdims=True)                         # (G, N, 1)
    y2 = jnp.einsum('gxd,gjd->gxj', ones_d, ys * ys,
                    preferred_element_type=jnp.float32)                  # (G, 1, N)

    def compute_cost():
        # torch.cdist(p=2)**2 / (2 sf^2) via the matmul expansion (MXU), clamped at 0.
        xy = jnp.einsum('gid,gjd->gij', xs, ys,
                        preferred_element_type=jnp.float32)              # (G, N, N)
        return jnp.maximum(x2 + y2 - 2.0 * xy, 0.0) * inv2s2

    def ktu_of(u, K):                          # (K^T u) as a (G, 1, N) row
        return jnp.einsum('gix,gij->gxj', u, K, preferred_element_type=jnp.float32)

    def kv_of(v, K):                           # (K v) as a (G, N, 1) column
        return jnp.einsum('gij,gxj->gix', K, v, preferred_element_type=jnp.float32)

    # --- init (warm_start=False: potentials flushed for every pair) ---
    cost0 = compute_cost()
    K0 = jnp.exp(-cost0 * inv_eps - logZ2)                   # getK with a = b = 0
    K_ref[...] = K0
    u_ref[...] = jnp.ones((G, N, 1), jnp.float32)
    v_ref[...] = jnp.ones((G, 1, N), jnp.float32)
    a_ref[...] = jnp.zeros((G, N, 1), jnp.float32)
    b_ref[...] = jnp.zeros((G, 1, N), jnp.float32)
    kt_ref[...] = jnp.sum(K0, axis=1, keepdims=True)         # K^T u with u = 1
    done_ref[...] = jnp.zeros((G, 1, 1), jnp.float32)        # per-pair converged mask
    alldone_ref[0] = 0
    stab_ref[0] = 0

    # TODO(synk): only the balanced (lamda_unbal=None) proxdiv branch is implemented;
    #             the unbalanced proxdiv_unbalanced path / branching_rate_fn weights are not.
    def body(_, carry):
        @pl.when(alldone_ref[0] == 0)          # early exit once every pair converged
        def _():
            K = K_ref[...]
            active = done_ref[...] < 0.5                                  # (G,1,1) bool
            v_n = inv_n / kt_ref[...]                                     # y_w / (K^T u)
            u_n = inv_n / kv_of(v_n, K)                                   # x_w / (K v)
            kt_n = ktu_of(u_n, K)                                         # K^T u (new u)
            # no floor on Kv / K^T u: divide-by-zero -> inf matches the torch reference
            err = jnp.max(jnp.abs(v_n * kt_n - inv_n), axis=2, keepdims=True)   # (G,1,1)
            conv = jnp.logical_or(err < atol, err * N < rtol)             # err/||y_w||inf = err*N
            maxuv = jnp.maximum(jnp.max(jnp.abs(u_n), axis=1, keepdims=True),
                                jnp.max(jnp.abs(v_n), axis=2, keepdims=True))
            # reference order: convergence break happens BEFORE the stabilization check
            need_stab = jnp.logical_and(
                active, jnp.logical_and(jnp.logical_not(conv), maxuv > thresh))

            # freeze converged pairs (per-pair "break" semantics preserved)
            u_ref[...] = jnp.where(active, u_n, u_ref[...])
            v_ref[...] = jnp.where(active, v_n, v_ref[...])
            kt_ref[...] = jnp.where(active, kt_n, kt_ref[...])
            done_new = jnp.where(jnp.logical_and(active, conv), 1.0, done_ref[...])
            done_ref[...] = done_new

            # route the chunk-level predicates through SMEM so branches see sreg scalars
            alldone_ref[0] = jnp.where(jnp.min(done_new) > 0.5, 1, 0).astype(jnp.int32)
            any_stab = jnp.max(jnp.where(need_stab, 1.0, 0.0))
            stab_ref[0] = jnp.where(any_stab > 0.5, 1, 0).astype(jnp.int32)

            @pl.when(stab_ref[0] == 1)         # rare: log-domain absorption
            def _():
                u_c = u_ref[...]
                v_c = v_ref[...]
                a_s = jnp.where(need_stab, a_ref[...] - eps * jnp.log(u_c), a_ref[...])
                b_s = jnp.where(need_stab, b_ref[...] - eps * jnp.log(v_c), b_ref[...])
                a_ref[...] = a_s
                b_ref[...] = b_s
                u_ref[...] = jnp.where(need_stab, 1.0, u_c)
                v_ref[...] = jnp.where(need_stab, 1.0, v_c)
                # C is not persisted: recompute it on the fly, re-exponentiate K
                K_s = jnp.exp(-(compute_cost() + a_s + b_s) * inv_eps - logZ2)
                K_new = jnp.where(need_stab, K_s, K)
                K_ref[...] = K_new
                kt_ref[...] = jnp.where(need_stab,
                                        jnp.sum(K_new, axis=1, keepdims=True),  # u reset to 1
                                        kt_ref[...])
        return carry

    lax.fori_loop(0, n_iter, body, 0)

    # --- dual objective (balanced: F* = <., p>) ---
    # K is dead now; reuse its scratch buffer for the recomputed cost matrix so the
    # epilogue's peak live VMEM stays ~2*N^2 per pair instead of ~5*N^2.
    K_ref[...] = compute_cost()
    C = K_ref[...]
    f = a_ref[...] - eps * jnp.log(u_ref[...])               # (G, N, 1)
    g = b_ref[...] - eps * jnp.log(v_ref[...])               # (G, 1, N)

    M1 = -(C + g) * inv_eps - logN                           # log(y_w) = -log N
    m1 = jnp.max(M1, axis=2, keepdims=True)
    f_cts = eps * (jnp.log(jnp.sum(jnp.exp(M1 - m1), axis=2, keepdims=True)) + m1) \
        - eps * logZ                                         # (G, N, 1)

    M2 = -(C + f) * inv_eps - logN                           # log(x_w) = -log N
    m2 = jnp.max(M2, axis=1, keepdims=True)
    g_cts = eps * (jnp.log(jnp.sum(jnp.exp(M2 - m2), axis=1, keepdims=True)) + m2) \
        - eps * logZ                                         # (G, 1, N)

    f1 = jnp.sum(f_cts, axis=1, keepdims=True) * inv_n       # <f_cts, x_w>   (G,1,1)
    f2 = jnp.sum(g_cts, axis=2, keepdims=True) * inv_n       # <g_cts, y_w>   (G,1,1)
    plan = jnp.exp(-(C + f_cts + g_cts) * inv_eps - logZ2)   # weights folded via logZ2
    plan_mass = jnp.sum(jnp.sum(plan, axis=2, keepdims=True), axis=1, keepdims=True)
    out_ref[...] = -f1 - f2 - eps * plan_mass                # (G, 1, 1)


def paths_loss(x, scale_factors, *, tau, dt, sinkhorn_iters,
               atol=1e-4, rtol=1e-4, thresh=100.0, max_pairs_per_step=16):
    """PathsLoss.forward (branching_rate_fn=None, lamda_unbal=None, warm_start=False)."""
    x = jnp.asarray(x, jnp.float32)
    T, N, d = x.shape
    assert T >= 2
    P = T - 1
    eps = float(tau * dt)
    logZ = math.log((2.0 * math.pi * eps) ** (d / 2.0))

    sf = jnp.asarray(scale_factors, jnp.float32).reshape(P)
    inv2s2 = (1.0 / (2.0 * sf * sf)).reshape(P, 1, 1)

    # stream x per pair: aligned (P, N, d) views -> clean (G, N, d) blocks per step
    xs = x[:-1]
    ys = x[1:]

    # generation-aware VMEM budget (≈48 MiB on v7x, ≈96 MiB on v5e/v6e)
    try:
        vmem_cap = int(pltpu.get_tpu_info().vmem_capacity_bytes)
    except Exception:
        vmem_cap = 64 * 1024 * 1024
    vmem_limit = max(32 * 1024 * 1024, (vmem_cap * 3) // 4)

    # pairs per grid step: largest divisor of P that fits half the budget (headroom
    # for double-buffered inputs and compiler temporaries), capped to limit the
    # wasted work of frozen (already-converged) pairs inside a chunk.
    per_pair_bytes = 12 * N * N + 16 * N * d + 1200 * N + 4096
    gmax = int(max(1, min(P, max_pairs_per_step, (vmem_limit // 2) // per_pair_bytes)))
    G = 1
    for cand in range(1, gmax + 1):
        if P % cand == 0:
            G = cand

    kernel = partial(_paths_loss_kernel, G=G, N=N, d=d, eps=eps, logZ=logZ,
                     n_iter=int(sinkhorn_iters), atol=float(atol),
                     rtol=float(rtol), thresh=float(thresh))

    n_it = int(sinkhorn_iters)
    cost_est = pl.CostEstimate(
        flops=int(P * (6 * N * N * d + n_it * 6 * N * N + 12 * N * N)),
        transcendentals=int(P * (5 * N * N + n_it * 4 * N)),
        bytes_accessed=int(4 * (2 * P * N * d + 2 * P)))

    per_pair = pl.pallas_call(
        kernel,
        out_shape=jax.ShapeDtypeStruct((P, 1, 1), jnp.float32),
        grid=(P // G,),
        in_specs=[
            pl.BlockSpec((G, N, d), lambda i: (i, 0, 0)),     # x[t]   chunk (streamed)
            pl.BlockSpec((G, N, d), lambda i: (i, 0, 0)),     # x[t+1] chunk (streamed)
            pl.BlockSpec((G, 1, 1), lambda i: (i, 0, 0)),     # 1/(2 sf^2) per pair
        ],
        out_specs=pl.BlockSpec((G, 1, 1), lambda i: (i, 0, 0)),
        scratch_shapes=[
            pltpu.VMEM((G, N, N), jnp.float32),   # K (reused to hold C in the epilogue)
            pltpu.VMEM((G, N, 1), jnp.float32),   # u
            pltpu.VMEM((G, 1, N), jnp.float32),   # v
            pltpu.VMEM((G, N, 1), jnp.float32),   # a
            pltpu.VMEM((G, 1, N), jnp.float32),   # b
            pltpu.VMEM((G, 1, N), jnp.float32),   # K^T u carried across iterations
            pltpu.VMEM((G, 1, 1), jnp.float32),   # per-pair converged mask
            pltpu.SMEM((1,), jnp.int32),          # all-pairs-converged flag (early exit)
            pltpu.SMEM((1,), jnp.int32),          # stabilize-this-iteration flag
        ],
        compiler_params=pltpu.CompilerParams(
            dimension_semantics=("parallel",),    # pair-chunks independent (v7x 2 TC)
            vmem_limit_bytes=int(vmem_limit)),
        cost_estimate=cost_est,
    )(xs, ys, inv2s2)
    return jnp.sum(per_pair) / dt


if __name__ == "__main__":
    T, N, d = 4, 16, 8
    key = jax.random.PRNGKey(0)
    x = jax.random.normal(key, (T, N, d), dtype=jnp.float32)
    # deterministic per-pair scale factors (module __init__ takes a scale_factors list)
    scale_factors = jnp.array([1.5, 2.0, 2.5], dtype=jnp.float32)
    tau, dt, sinkhorn_iters = 1.0, 0.5, 50

    loss = paths_loss(x, scale_factors, tau=tau, dt=dt,
                      sinkhorn_iters=sinkhorn_iters)
    loss = jax.block_until_ready(loss)
    assert bool(jnp.isfinite(loss)), "non-finite loss"
    print("KERNEL_OK")
</pallas_src>

<mosaic_0001>
module attributes {stable_mosaic.version = 11 : i64} {
  func.func @_paths_loss_kernel(%arg0: i32, %arg1: memref<3x16x8xf32, #tpu.memory_space<vmem>>, %arg2: memref<3x16x8xf32, #tpu.memory_space<vmem>>, %arg3: memref<3x1x1xf32, #tpu.memory_space<vmem>>, %arg4: memref<3x1x1xf32, #tpu.memory_space<vmem>>, %arg5: memref<3x16x16xf32, #tpu.memory_space<vmem>>, %arg6: memref<3x16x1xf32, #tpu.memory_space<vmem>>, %arg7: memref<3x1x16xf32, #tpu.memory_space<vmem>>, %arg8: memref<3x16x1xf32, #tpu.memory_space<vmem>>, %arg9: memref<3x1x16xf32, #tpu.memory_space<vmem>>, %arg10: memref<3x1x16xf32, #tpu.memory_space<vmem>>, %arg11: memref<3x1x1xf32, #tpu.memory_space<vmem>>, %arg12: memref<1xi32, #tpu.memory_space<smem>>, %arg13: memref<1xi32, #tpu.memory_space<smem>>) attributes {dimension_semantics = [#tpu.dimension_semantics<parallel>], iteration_bounds = array<i64: 1>, scalar_prefetch = 0 : i64, scratch_operands = 9 : i64, tpu.core_type = #tpu.core_type<tc>, window_params = [{transform_indices = @transform_0, window_bounds = array<i64: 3, 16, 8>}, {transform_indices = @transform_1, window_bounds = array<i64: 3, 16, 8>}, {transform_indices = @transform_2, window_bounds = array<i64: 3, 1, 1>}, {transform_indices = @transform_3, window_bounds = array<i64: 3, 1, 1>}]} {
    %c0 = arith.constant 0 : index
    %c0_0 = arith.constant 0 : index
    %c0_1 = arith.constant 0 : index
    %0 = vector.load %arg1[%c0, %c0_0, %c0_1] : memref<3x16x8xf32, #tpu.memory_space<vmem>>, vector<3x16x8xf32>
    %c0_2 = arith.constant 0 : index
    %c0_3 = arith.constant 0 : index
    %c0_4 = arith.constant 0 : index
    %1 = vector.load %arg2[%c0_2, %c0_3, %c0_4] : memref<3x16x8xf32, #tpu.memory_space<vmem>>, vector<3x16x8xf32>
    %c0_5 = arith.constant 0 : index
    %c0_6 = arith.constant 0 : index
    %c0_7 = arith.constant 0 : index
    %2 = vector.load %arg3[%c0_5, %c0_6, %c0_7] : memref<3x1x1xf32, #tpu.memory_space<vmem>>, vector<3x1x1xf32>
    %cst = arith.constant 1.000000e+00 : f32
    %3 = vector.broadcast %cst : f32 to vector<3x1x8xf32>
    %4 = arith.mulf %0, %0 : vector<3x16x8xf32>
    %cst_8 = arith.constant dense<0.000000e+00> : vector<3x16xf32>
    %5 = vector.multi_reduction <add>, %4, %cst_8 [2] : vector<3x16x8xf32> to vector<3x16xf32>
    %6 = vector.shape_cast %5 : vector<3x16xf32> to vector<3x16x1xf32>
    %7 = arith.mulf %1, %1 : vector<3x16x8xf32>
    "tpu.trace_start"() <{level = 10 : i32, message = "gxd,gjd->gxj"}> : () -> ()
    %cst_9 = arith.constant dense<0.000000e+00> : vector<3x1x16xf32>
    %8 = tpu.matmul %3, %7, %cst_9 {dimension_numbers = #tpu.dot_dimension_numbers<[2], [2], [1], [1], [0, 0, 0, 1, 1, 1], [0], [0]>} : vector<3x1x8xf32>, vector<3x16x8xf32>, vector<3x1x16xf32> -> vector<3x1x16xf32>
    "tpu.trace_stop"() : () -> ()
    "tpu.trace_start"() <{level = 10 : i32, message = "gid,gjd->gij"}> : () -> ()
    %cst_10 = arith.constant dense<0.000000e+00> : vector<3x16x16xf32>
    %9 = tpu.matmul %0, %1, %cst_10 {dimension_numbers = #tpu.dot_dimension_numbers<[2], [2], [1], [1], [0, 0, 0, 1, 1, 1], [0], [0]>} : vector<3x16x8xf32>, vector<3x16x8xf32>, vector<3x16x16xf32> -> vector<3x16x16xf32>
    "tpu.trace_stop"() : () -> ()
    %10 = vector.broadcast %6 : vector<3x16x1xf32> to vector<3x16x16xf32>
    %11 = vector.broadcast %8 : vector<3x1x16xf32> to vector<3x16x16xf32>
    %12 = arith.addf %10, %11 : vector<3x16x16xf32>
    %cst_11 = arith.constant 2.000000e+00 : f32
    %13 = vector.broadcast %cst_11 : f32 to vector<3x16x16xf32>
    %14 = arith.mulf %13, %9 : vector<3x16x16xf32>
    %15 = arith.subf %12, %14 : vector<3x16x16xf32>
    %cst_12 = arith.constant 0.000000e+00 : f32
    %16 = vector.broadcast %cst_12 : f32 to vector<3x16x16xf32>
    %17 = arith.maximumf %15, %16 : vector<3x16x16xf32>
    %18 = vector.broadcast %2 : vector<3x1x1xf32> to vector<3x16x16xf32>
    %19 = arith.mulf %17, %18 : vector<3x16x16xf32>
    %cst_13 = arith.constant 0.000000e+00 : f32
    %20 = vector.broadcast %cst_13 : f32 to vector<3x16x16xf32>
    %21 = arith.subf %20, %19 : vector<3x16x16xf32>
    %cst_14 = arith.constant 2.000000e+00 : f32
    %22 = vector.broadcast %cst_14 : f32 to vector<3x16x16xf32>
    %23 = arith.mulf %21, %22 : vector<3x16x16xf32>
    %cst_15 = arith.constant 10.1240969 : f32
    %24 = vector.broadcast %cst_15 : f32 to vector<3x16x16xf32>
    %25 = arith.subf %23, %24 : vector<3x16x16xf32>
    %26 = math.exp %25 : vector<3x16x16xf32>
    %c0_16 = arith.constant 0 : index
    %c0_17 = arith.constant 0 : index
    %c0_18 = arith.constant 0 : index
    %27 = vector.load %arg5[%c0_16, %c0_17, %c0_18] : memref<3x16x16xf32, #tpu.memory_space<vmem>>, vector<3x16x16xf32>
    tpu.vector_store %arg5[%c0_16, %c0_17, %c0_18], %26 {strides = array<i32>} : memref<3x16x16xf32, #tpu.memory_space<vmem>>, vector<3x16x16xf32>,
    %cst_19 = arith.constant 1.000000e+00 : f32
    %28 = vector.broadcast %cst_19 : f32 to vector<3x16x1xf32>
    %c0_20 = arith.constant 0 : index
    %c0_21 = arith.constant 0 : index
    %c0_22 = arith.constant 0 : index
    %29 = vector.load %arg6[%c0_20, %c0_21, %c0_22] : memref<3x16x1xf32, #tpu.memory_space<vmem>>, vector<3x16x1xf32>
    tpu.vector_store %arg6[%c0_20, %c0_21, %c0_22], %28 {strides = array<i32>} : memref<3x16x1xf32, #tpu.memory_space<vmem>>, vector<3x16x1xf32>,
    %cst_23 = arith.constant 1.000000e+00 : f32
    %30 = vector.broadcast %cst_23 : f32 to vector<3x1x16xf32>
    %c0_24 = arith.constant 0 : index
    %c0_25 = arith.constant 0 : index
    %c0_26 = arith.constant 0 : index
    %31 = vector.load %arg7[%c0_24, %c0_25, %c0_26] : memref<3x1x16xf32, #tpu.memory_space<vmem>>, vector<3x1x16xf32>
    tpu.vector_store %arg7[%c0_24, %c0_25, %c0_26], %30 {strides = array<i32>} : memref<3x1x16xf32, #tpu.memory_space<vmem>>, vector<3x1x16xf32>,
    %cst_27 = arith.constant 0.000000e+00 : f32
    %32 = vector.broadcast %cst_27 : f32 to vector<3x16x1xf32>
    %c0_28 = arith.constant 0 : index
    %c0_29 = arith.constant 0 : index
    %c0_30 = arith.constant 0 : index
    %33 = vector.load %arg8[%c0_28, %c0_29, %c0_30] : memref<3x16x1xf32, #tpu.memory_space<vmem>>, vector<3x16x1xf32>
    tpu.vector_store %arg8[%c0_28, %c0_29, %c0_30], %32 {strides = array<i32>} : memref<3x16x1xf32, #tpu.memory_space<vmem>>, vector<3x16x1xf32>,
    %cst_31 = arith.constant 0.000000e+00 : f32
    %34 = vector.broadcast %cst_31 : f32 to vector<3x1x16xf32>
    %c0_32 = arith.constant 0 : index
    %c0_33 = arith.constant 0 : index
    %c0_34 = arith.constant 0 : index
    %35 = vector.load %arg9[%c0_32, %c0_33, %c0_34] : memref<3x1x16xf32, #tpu.memory_space<vmem>>, vector<3x1x16xf32>
    tpu.vector_store %arg9[%c0_32, %c0_33, %c0_34], %34 {strides = array<i32>} : memref<3x1x16xf32, #tpu.memory_space<vmem>>, vector<3x1x16xf32>,
    %cst_35 = arith.constant dense<0.000000e+00> : vector<3x16xf32>
    %36 = vector.multi_reduction <add>, %26, %cst_35 [1] : vector<3x16x16xf32> to vector<3x16xf32>
    %37 = vector.shape_cast %36 : vector<3x16xf32> to vector<3x1x16xf32>
    %c0_36 = arith.constant 0 : index
    %c0_37 = arith.constant 0 : index
    %c0_38 = arith.constant 0 : index
    %38 = vector.load %arg10[%c0_36, %c0_37, %c0_38] : memref<3x1x16xf32, #tpu.memory_space<vmem>>, vector<3x1x16xf32>
    tpu.vector_store %arg10[%c0_36, %c0_37, %c0_38], %37 {strides = array<i32>} : memref<3x1x16xf32, #tpu.memory_space<vmem>>, vector<3x1x16xf32>,
    %cst_39 = arith.constant 0.000000e+00 : f32
    %39 = vector.broadcast %cst_39 : f32 to vector<3x1x1xf32>
    %c0_40 = arith.constant 0 : index
    %c0_41 = arith.constant 0 : index
    %c0_42 = arith.constant 0 : index
    %40 = vector.load %arg11[%c0_40, %c0_41, %c0_42] : memref<3x1x1xf32, #tpu.memory_space<vmem>>, vector<3x1x1xf32>
    tpu.vector_store %arg11[%c0_40, %c0_41, %c0_42], %39 {strides = array<i32>} : memref<3x1x1xf32, #tpu.memory_space<vmem>>, vector<3x1x1xf32>,
    %c0_i32 = arith.constant 0 : i32
    %c0_43 = arith.constant 0 : index
    %41 = memref.load %arg12[%c0_43] : memref<1xi32, #tpu.memory_space<smem>>
    memref.store %c0_i32, %arg12[%c0_43] : memref<1xi32, #tpu.memory_space<smem>>
    %c0_i32_44 = arith.constant 0 : i32
    %c0_45 = arith.constant 0 : index
    %42 = memref.load %arg13[%c0_45] : memref<1xi32, #tpu.memory_space<smem>>
    memref.store %c0_i32_44, %arg13[%c0_45] : memref<1xi32, #tpu.memory_space<smem>>
    %c0_i32_46 = arith.constant 0 : i32
    %c50_i32 = arith.constant 50 : i32
    %43 = arith.addi %c0_i32_46, %c50_i32 : i32
    %c1_i32 = arith.constant 1 : i32
    scf.for %arg14 = %c0_i32_46 to %43 step %c1_i32  : i32 {
      %c0_98 = arith.constant 0 : index
      %141 = memref.load %arg12[%c0_98] : memref<1xi32, #tpu.memory_space<smem>>
      %c0_i32_99 = arith.constant 0 : i32
      %142 = arith.cmpi eq, %141, %c0_i32_99 : i32
      %143 = arith.extui %142 : i1 to i32
      %c0_i32_100 = arith.constant 0 : i32
      %144 = arith.cmpi ne, %143, %c0_i32_100 : i32
      scf.if %144 {
        %c0_101 = arith.constant 0 : index
        %c0_102 = arith.constant 0 : index
        %c0_103 = arith.constant 0 : index
        %145 = vector.load %arg5[%c0_101, %c0_102, %c0_103] : memref<3x16x16xf32, #tpu.memory_space<vmem>>, vector<3x16x16xf32>
        %c0_104 = arith.constant 0 : index
        %c0_105 = arith.constant 0 : index
        %c0_106 = arith.constant 0 : index
        %146 = vector.load %arg11[%c0_104, %c0_105, %c0_106] : memref<3x1x1xf32, #tpu.memory_space<vmem>>, vector<3x1x1xf32>
        %cst_107 = arith.constant 5.000000e-01 : f32
        %147 = vector.broadcast %cst_107 : f32 to vector<3x1x1xf32>
        %148 = arith.cmpf olt, %146, %147 : vector<3x1x1xf32>
        %c0_108 = arith.constant 0 : index
        %c0_109 = arith.constant 0 : index
        %c0_110 = arith.constant 0 : index
        %149 = vector.load %arg10[%c0_108, %c0_109, %c0_110] : memref<3x1x16xf32, #tpu.memory_space<vmem>>, vector<3x1x16xf32>
        %cst_111 = arith.constant 6.250000e-02 : f32
        %150 = vector.broadcast %cst_111 : f32 to vector<3x1x16xf32>
        %151 = arith.divf %150, %149 : vector<3x1x16xf32>
        "tpu.trace_start"() <{level = 10 : i32, message = "gij,gxj->gix"}> : () -> ()
        %cst_112 = arith.constant dense<0.000000e+00> : vector<3x16x1xf32>
        %152 = tpu.matmul %145, %151, %cst_112 {dimension_numbers = #tpu.dot_dimension_numbers<[2], [2], [1], [1], [0, 0, 0, 1, 1, 1], [0], [0]>} : vector<3x16x16xf32>, vector<3x1x16xf32>, vector<3x16x1xf32> -> vector<3x16x1xf32>
        "tpu.trace_stop"() : () -> ()
        %cst_113 = arith.constant 6.250000e-02 : f32
        %153 = vector.broadcast %cst_113 : f32 to vector<3x16x1xf32>
        %154 = arith.divf %153, %152 : vector<3x16x1xf32>
        "tpu.trace_start"() <{level = 10 : i32, message = "gix,gij->gxj"}> : () -> ()
        %cst_114 = arith.constant dense<0.000000e+00> : vector<3x1x16xf32>
        %155 = tpu.matmul %154, %145, %cst_114 {dimension_numbers = #tpu.dot_dimension_numbers<[1], [1], [2], [2], [0, 0, 0, 2, 1, 2], [0], [0]>} : vector<3x16x1xf32>, vector<3x16x16xf32>, vector<3x1x16xf32> -> vector<3x1x16xf32>
        "tpu.trace_stop"() : () -> ()
        %156 = arith.mulf %151, %155 : vector<3x1x16xf32>
        %cst_115 = arith.constant 6.250000e-02 : f32
        %157 = vector.broadcast %cst_115 : f32 to vector<3x1x16xf32>
        %158 = arith.subf %156, %157 : vector<3x1x16xf32>
        %159 = math.absf %158 : vector<3x1x16xf32>
        %cst_116 = arith.constant dense<0xFF800000> : vector<3x1xf32>
        %160 = vector.multi_reduction <maximumf>, %159, %cst_116 [2] : vector<3x1x16xf32> to vector<3x1xf32>
        %161 = vector.shape_cast %160 : vector<3x1xf32> to vector<3x1x1xf32>
        %cst_117 = arith.constant 9.99999974E-5 : f32
        %162 = vector.broadcast %cst_117 : f32 to vector<3x1x1xf32>
        %163 = arith.cmpf olt, %161, %162 : vector<3x1x1xf32>
        %cst_118 = arith.constant 1.600000e+01 : f32
        %164 = vector.broadcast %cst_118 : f32 to vector<3x1x1xf32>
        %165 = arith.mulf %161, %164 : vector<3x1x1xf32>
        %cst_119 = arith.constant 9.99999974E-5 : f32
        %166 = vector.broadcast %cst_119 : f32 to vector<3x1x1xf32>
        %167 = arith.cmpf olt, %165, %166 : vector<3x1x1xf32>
        %168 = arith.ori %163, %167 : vector<3x1x1xi1>
        %169 = math.absf %154 : vector<3x16x1xf32>
        %cst_120 = arith.constant dense<0xFF800000> : vector<3x1xf32>
        %170 = vector.multi_reduction <maximumf>, %169, %cst_120 [1] : vector<3x16x1xf32> to vector<3x1xf32>
        %171 = vector.shape_cast %170 : vector<3x1xf32> to vector<3x1x1xf32>
        %172 = math.absf %151 : vector<3x1x16xf32>
        %cst_121 = arith.constant dense<0xFF800000> : vector<3x1xf32>
        %173 = vector.multi_reduction <maximumf>, %172, %cst_121 [2] : vector<3x1x16xf32> to vector<3x1xf32>
        %174 = vector.shape_cast %173 : vector<3x1xf32> to vector<3x1x1xf32>
        %175 = arith.maximumf %171, %174 : vector<3x1x1xf32>
        %cst_122 = arith.constant dense<true> : vector<3x1x1xi1>
        %176 = arith.xori %168, %cst_122 : vector<3x1x1xi1>
        %cst_123 = arith.constant 1.000000e+02 : f32
        %177 = vector.broadcast %cst_123 : f32 to vector<3x1x1xf32>
        %178 = arith.cmpf ogt, %175, %177 : vector<3x1x1xf32>
        %179 = arith.andi %176, %178 : vector<3x1x1xi1>
        %180 = arith.andi %148, %179 : vector<3x1x1xi1>
        %c0_124 = arith.constant 0 : index
        %c0_125 = arith.constant 0 : index
        %c0_126 = arith.constant 0 : index
        %181 = vector.load %arg6[%c0_124, %c0_125, %c0_126] : memref<3x16x1xf32, #tpu.memory_space<vmem>>, vector<3x16x1xf32>
        %182 = vector.shape_cast %148 : vector<3x1x1xi1> to vector<3x1x1xi1>
        %183 = vector.broadcast %182 : vector<3x1x1xi1> to vector<3x16x1xi1>
        %184 = arith.select %183, %154, %181 : vector<3x16x1xi1>, vector<3x16x1xf32>
        %c0_127 = arith.constant 0 : index
        %c0_128 = arith.constant 0 : index
        %c0_129 = arith.constant 0 : index
        %185 = vector.load %arg6[%c0_127, %c0_128, %c0_129] : memref<3x16x1xf32, #tpu.memory_space<vmem>>, vector<3x16x1xf32>
        tpu.vector_store %arg6[%c0_127, %c0_128, %c0_129], %184 {strides = array<i32>} : memref<3x16x1xf32, #tpu.memory_space<vmem>>, vector<3x16x1xf32>,
        %c0_130 = arith.constant 0 : index
        %c0_131 = arith.constant 0 : index
        %c0_132 = arith.constant 0 : index
        %186 = vector.load %arg7[%c0_130, %c0_131, %c0_132] : memref<3x1x16xf32, #tpu.memory_space<vmem>>, vector<3x1x16xf32>
        %187 = vector.shape_cast %148 : vector<3x1x1xi1> to vector<3x1x1xi1>
        %188 = vector.broadcast %187 : vector<3x1x1xi1> to vector<3x1x16xi1>
        %189 = arith.select %188, %151, %186 : vector<3x1x16xi1>, vector<3x1x16xf32>
        %c0_133 = arith.constant 0 : index
        %c0_134 = arith.constant 0 : index
        %c0_135 = arith.constant 0 : index
        %190 = vector.load %arg7[%c0_133, %c0_134, %c0_135] : memref<3x1x16xf32, #tpu.memory_space<vmem>>, vector<3x1x16xf32>
        tpu.vector_store %arg7[%c0_133, %c0_134, %c0_135], %189 {strides = array<i32>} : memref<3x1x16xf32, #tpu.memory_space<vmem>>, vector<3x1x16xf32>,
        %c0_136 = arith.constant 0 : index
        %c0_137 = arith.constant 0 : index
        %c0_138 = arith.constant 0 : index
        %191 = vector.load %arg10[%c0_136, %c0_137, %c0_138] : memref<3x1x16xf32, #tpu.memory_space<vmem>>, vector<3x1x16xf32>
        %192 = vector.shape_cast %148 : vector<3x1x1xi1> to vector<3x1x1xi1>
        %193 = vector.broadcast %192 : vector<3x1x1xi1> to vector<3x1x16xi1>
        %194 = arith.select %193, %155, %191 : vector<3x1x16xi1>, vector<3x1x16xf32>
        %c0_139 = arith.constant 0 : index
        %c0_140 = arith.constant 0 : index
        %c0_141 = arith.constant 0 : index
        %195 = vector.load %arg10[%c0_139, %c0_140, %c0_141] : memref<3x1x16xf32, #tpu.memory_space<vmem>>, vector<3x1x16xf32>
        tpu.vector_store %arg10[%c0_139, %c0_140, %c0_141], %194 {strides = array<i32>} : memref<3x1x16xf32, #tpu.memory_space<vmem>>, vector<3x1x16xf32>,
        %196 = arith.andi %148, %168 : vector<3x1x1xi1>
        %c0_142 = arith.constant 0 : index
        %c0_143 = arith.constant 0 : index
        %c0_144 = arith.constant 0 : index
        %197 = vector.load %arg11[%c0_142, %c0_143, %c0_144] : memref<3x1x1xf32, #tpu.memory_space<vmem>>, vector<3x1x1xf32>
        %cst_145 = arith.constant 1.000000e+00 : f32
        %198 = vector.broadcast %cst_145 : f32 to vector<3x1x1xf32>
        %199 = arith.select %196, %198, %197 : vector<3x1x1xi1>, vector<3x1x1xf32>
        %c0_146 = arith.constant 0 : index
        %c0_147 = arith.constant 0 : index
        %c0_148 = arith.constant 0 : index
        %200 = vector.load %arg11[%c0_146, %c0_147, %c0_148] : memref<3x1x1xf32, #tpu.memory_space<vmem>>, vector<3x1x1xf32>
        tpu.vector_store %arg11[%c0_146, %c0_147, %c0_148], %199 {strides = array<i32>} : memref<3x1x1xf32, #tpu.memory_space<vmem>>, vector<3x1x1xf32>,
        %201 = vector.shape_cast %199 : vector<3x1x1xf32> to vector<1x3x1x1xf32>
        %cst_149 = arith.constant dense<0x7F800000> : vector<1xf32>
        %202 = vector.multi_reduction <minimumf>, %201, %cst_149 [1, 2, 3] : vector<1x3x1x1xf32> to vector<1xf32>
        %203 = vector.shape_cast %202 : vector<1xf32> to vector<1x1x1x1xf32>
        %204 = vector.extract %203[0, 0, 0, 0] : f32 from vector<1x1x1x1xf32>
        %cst_150 = arith.constant 5.000000e-01 : f32
        %205 = arith.cmpf ogt, %204, %cst_150 : f32
        %c1_i32_151 = arith.constant 1 : i32
        %c0_i32_152 = arith.constant 0 : i32
        %206 = arith.select %205, %c1_i32_151, %c0_i32_152 : i32
        %c0_153 = arith.constant 0 : index
        %207 = memref.load %arg12[%c0_153] : memref<1xi32, #tpu.memory_space<smem>>
        memref.store %206, %arg12[%c0_153] : memref<1xi32, #tpu.memory_space<smem>>
        %cst_154 = arith.constant 1.000000e+00 : f32
        %cst_155 = arith.constant 0.000000e+00 : f32
        %208 = vector.broadcast %cst_154 : f32 to vector<3x1x1xf32>
        %209 = vector.broadcast %cst_155 : f32 to vector<3x1x1xf32>
        %210 = arith.select %180, %208, %209 : vector<3x1x1xi1>, vector<3x1x1xf32>
        %211 = vector.shape_cast %210 : vector<3x1x1xf32> to vector<1x3x1x1xf32>
        %cst_156 = arith.constant dense<0xFF800000> : vector<1xf32>
        %212 = vector.multi_reduction <maximumf>, %211, %cst_156 [1, 2, 3] : vector<1x3x1x1xf32> to vector<1xf32>
        %213 = vector.shape_cast %212 : vector<1xf32> to vector<1x1x1x1xf32>
        %214 = vector.extract %213[0, 0, 0, 0] : f32 from vector<1x1x1x1xf32>
        %cst_157 = arith.constant 5.000000e-01 : f32
        %215 = arith.cmpf ogt, %214, %cst_157 : f32
        %c1_i32_158 = arith.constant 1 : i32
        %c0_i32_159 = arith.constant 0 : i32
        %216 = arith.select %215, %c1_i32_158, %c0_i32_159 : i32
        %c0_160 = arith.constant 0 : index
        %217 = memref.load %arg13[%c0_160] : memref<1xi32, #tpu.memory_space<smem>>
        memref.store %216, %arg13[%c0_160] : memref<1xi32, #tpu.memory_space<smem>>
        %c0_161 = arith.constant 0 : index
        %218 = memref.load %arg13[%c0_161] : memref<1xi32, #tpu.memory_space<smem>>
        %c1_i32_162 = arith.constant 1 : i32
        %219 = arith.cmpi eq, %218, %c1_i32_162 : i32
        %220 = arith.extui %219 : i1 to i32
        %c0_i32_163 = arith.constant 0 : i32
        %221 = arith.cmpi ne, %220, %c0_i32_163 : i32
        scf.if %221 {
          %c0_164 = arith.constant 0 : index
          %c0_165 = arith.constant 0 : index
          %c0_166 = arith.constant 0 : index
          %222 = vector.load %arg6[%c0_164, %c0_165, %c0_166] : memref<3x16x1xf32, #tpu.memory_space<vmem>>, vector<3x16x1xf32>
          %c0_167 = arith.constant 0 : index
          %c0_168 = arith.constant 0 : index
          %c0_169 = arith.constant 0 : index
          %223 = vector.load %arg7[%c0_167, %c0_168, %c0_169] : memref<3x1x16xf32, #tpu.memory_space<vmem>>, vector<3x1x16xf32>
          %c0_170 = arith.constant 0 : index
          %c0_171 = arith.constant 0 : index
          %c0_172 = arith.constant 0 : index
          %224 = vector.load %arg8[%c0_170, %c0_171, %c0_172] : memref<3x16x1xf32, #tpu.memory_space<vmem>>, vector<3x16x1xf32>
          %225 = math.log %222 : vector<3x16x1xf32>
          %cst_173 = arith.constant 5.000000e-01 : f32
          %226 = vector.broadcast %cst_173 : f32 to vector<3x16x1xf32>
          %227 = arith.mulf %226, %225 : vector<3x16x1xf32>
          %228 = arith.subf %224, %227 : vector<3x16x1xf32>
          %c0_174 = arith.constant 0 : index
          %c0_175 = arith.constant 0 : index
          %c0_176 = arith.constant 0 : index
          %229 = vector.load %arg8[%c0_174, %c0_175, %c0_176] : memref<3x16x1xf32, #tpu.memory_space<vmem>>, vector<3x16x1xf32>
          %230 = vector.shape_cast %180 : vector<3x1x1xi1> to vector<3x1x1xi1>
          %231 = vector.broadcast %230 : vector<3x1x1xi1> to vector<3x16x1xi1>
          %232 = arith.select %231, %228, %229 : vector<3x16x1xi1>, vector<3x16x1xf32>
          %c0_177 = arith.constant 0 : index
          %c0_178 = arith.constant 0 : index
          %c0_179 = arith.constant 0 : index
          %233 = vector.load %arg9[%c0_177, %c0_178, %c0_179] : memref<3x1x16xf32, #tpu.memory_space<vmem>>, vector<3x1x16xf32>
          %234 = math.log %223 : vector<3x1x16xf32>
          %cst_180 = arith.constant 5.000000e-01 : f32
          %235 = vector.broadcast %cst_180 : f32 to vector<3x1x16xf32>
          %236 = arith.mulf %235, %234 : vector<3x1x16xf32>
          %237 = arith.subf %233, %236 : vector<3x1x16xf32>
          %c0_181 = arith.constant 0 : index
          %c0_182 = arith.constant 0 : index
          %c0_183 = arith.constant 0 : index
          %238 = vector.load %arg9[%c0_181, %c0_182, %c0_183] : memref<3x1x16xf32, #tpu.memory_space<vmem>>, vector<3x1x16xf32>
          %239 = vector.shape_cast %180 : vector<3x1x1xi1> to vector<3x1x1xi1>
          %240 = vector.broadcast %239 : vector<3x1x1xi1> to vector<3x1x16xi1>
          %241 = arith.select %240, %237, %238 : vector<3x1x16xi1>, vector<3x1x16xf32>
          %c0_184 = arith.constant 0 : index
          %c0_185 = arith.constant 0 : index
          %c0_186 = arith.constant 0 : index
          %242 = vector.load %arg8[%c0_184, %c0_185, %c0_186] : memref<3x16x1xf32, #tpu.memory_space<vmem>>, vector<3x16x1xf32>
          tpu.vector_store %arg8[%c0_184, %c0_185, %c0_186], %232 {strides = array<i32>} : memref<3x16x1xf32, #tpu.memory_space<vmem>>, vector<3x16x1xf32>,
          %c0_187 = arith.constant 0 : index
          %c0_188 = arith.constant 0 : index
          %c0_189 = arith.constant 0 : index
          %243 = vector.load %arg9[%c0_187, %c0_188, %c0_189] : memref<3x1x16xf32, #tpu.memory_space<vmem>>, vector<3x1x16xf32>
          tpu.vector_store %arg9[%c0_187, %c0_188, %c0_189], %241 {strides = array<i32>} : memref<3x1x16xf32, #tpu.memory_space<vmem>>, vector<3x1x16xf32>,
          %cst_190 = arith.constant 1.000000e+00 : f32
          %244 = vector.shape_cast %180 : vector<3x1x1xi1> to vector<3x1x1xi1>
          %245 = vector.broadcast %244 : vector<3x1x1xi1> to vector<3x16x1xi1>
          %246 = vector.broadcast %cst_190 : f32 to vector<3x16x1xf32>
          %247 = arith.select %245, %246, %222 : vector<3x16x1xi1>, vector<3x16x1xf32>
          %c0_191 = arith.constant 0 : index
          %c0_192 = arith.constant 0 : index
          %c0_193 = arith.constant 0 : index
          %248 = vector.load %arg6[%c0_191, %c0_192, %c0_193] : memref<3x16x1xf32, #tpu.memory_space<vmem>>, vector<3x16x1xf32>
          tpu.vector_store %arg6[%c0_191, %c0_192, %c0_193], %247 {strides = array<i32>} : memref<3x16x1xf32, #tpu.memory_space<vmem>>, vector<3x16x1xf32>,
          %cst_194 = arith.constant 1.000000e+00 : f32
          %249 = vector.shape_cast %180 : vector<3x1x1xi1> to vector<3x1x1xi1>
          %250 = vector.broadcast %249 : vector<3x1x1xi1> to vector<3x1x16xi1>
          %251 = vector.broadcast %cst_194 : f32 to vector<3x1x16xf32>
          %252 = arith.select %250, %251, %223 : vector<3x1x16xi1>, vector<3x1x16xf32>
          %c0_195 = arith.constant 0 : index
          %c0_196 = arith.constant 0 : index
          %c0_197 = arith.constant 0 : index
          %253 = vector.load %arg7[%c0_195, %c0_196, %c0_197] : memref<3x1x16xf32, #tpu.memory_space<vmem>>, vector<3x1x16xf32>
          tpu.vector_store %arg7[%c0_195, %c0_196, %c0_197], %252 {strides = array<i32>} : memref<3x1x16xf32, #tpu.memory_space<vmem>>, vector<3x1x16xf32>,
          "tpu.trace_start"() <{level = 10 : i32, message = "gid,gjd->gij"}> : () -> ()
          %cst_198 = arith.constant dense<0.000000e+00> : vector<3x16x16xf32>
          %254 = tpu.matmul %0, %1, %cst_198 {dimension_numbers = #tpu.dot_dimension_numbers<[2], [2], [1], [1], [0, 0, 0, 1, 1, 1], [0], [0]>} : vector<3x16x8xf32>, vector<3x16x8xf32>, vector<3x16x16xf32> -> vector<3x16x16xf32>
          "tpu.trace_stop"() : () -> ()
          %255 = vector.broadcast %6 : vector<3x16x1xf32> to vector<3x16x16xf32>
          %256 = vector.broadcast %8 : vector<3x1x16xf32> to vector<3x16x16xf32>
          %257 = arith.addf %255, %256 : vector<3x16x16xf32>
          %cst_199 = arith.constant 2.000000e+00 : f32
          %258 = vector.broadcast %cst_199 : f32 to vector<3x16x16xf32>
          %259 = arith.mulf %258, %254 : vector<3x16x16xf32>
          %260 = arith.subf %257, %259 : vector<3x16x16xf32>
          %cst_200 = arith.constant 0.000000e+00 : f32
          %261 = vector.broadcast %cst_200 : f32 to vector<3x16x16xf32>
          %262 = arith.maximumf %260, %261 : vector<3x16x16xf32>
          %263 = vector.broadcast %2 : vector<3x1x1xf32> to vector<3x16x16xf32>
          %264 = arith.mulf %262, %263 : vector<3x16x16xf32>
          %265 = vector.broadcast %232 : vector<3x16x1xf32> to vector<3x16x16xf32>
          %266 = arith.addf %264, %265 : vector<3x16x16xf32>
          %267 = vector.broadcast %241 : vector<3x1x16xf32> to vector<3x16x16xf32>
          %268 = arith.addf %266, %267 : vector<3x16x16xf32>
          %cst_201 = arith.constant 0.000000e+00 : f32
          %269 = vector.broadcast %cst_201 : f32 to vector<3x16x16xf32>
          %270 = arith.subf %269, %268 : vector<3x16x16xf32>
          %cst_202 = arith.constant 2.000000e+00 : f32
          %271 = vector.broadcast %cst_202 : f32 to vector<3x16x16xf32>
          %272 = arith.mulf %270, %271 : vector<3x16x16xf32>
          %cst_203 = arith.constant 10.1240969 : f32
          %273 = vector.broadcast %cst_203 : f32 to vector<3x16x16xf32>
          %274 = arith.subf %272, %273 : vector<3x16x16xf32>
          %275 = math.exp %274 : vector<3x16x16xf32>
          %276 = vector.shape_cast %180 : vector<3x1x1xi1> to vector<3x1x1xi1>
          %277 = vector.broadcast %276 : vector<3x1x1xi1> to vector<3x16x16xi1>
          %278 = arith.select %277, %275, %145 : vector<3x16x16xi1>, vector<3x16x16xf32>
          %c0_204 = arith.constant 0 : index
          %c0_205 = arith.constant 0 : index
          %c0_206 = arith.constant 0 : index
          %279 = vector.load %arg5[%c0_204, %c0_205, %c0_206] : memref<3x16x16xf32, #tpu.memory_space<vmem>>, vector<3x16x16xf32>
          tpu.vector_store %arg5[%c0_204, %c0_205, %c0_206], %278 {strides = array<i32>} : memref<3x16x16xf32, #tpu.memory_space<vmem>>, vector<3x16x16xf32>,
          %cst_207 = arith.constant dense<0.000000e+00> : vector<3x16xf32>
          %280 = vector.multi_reduction <add>, %278, %cst_207 [1] : vector<3x16x16xf32> to vector<3x16xf32>
          %281 = vector.shape_cast %280 : vector<3x16xf32> to vector<3x1x16xf32>
          %c0_208 = arith.constant 0 : index
          %c0_209 = arith.constant 0 : index
          %c0_210 = arith.constant 0 : index
          %282 = vector.load %arg10[%c0_208, %c0_209, %c0_210] : memref<3x1x16xf32, #tpu.memory_space<vmem>>, vector<3x1x16xf32>
          %283 = vector.shape_cast %180 : vector<3x1x1xi1> to vector<3x1x1xi1>
          %284 = vector.broadcast %283 : vector<3x1x1xi1> to vector<3x1x16xi1>
          %285 = arith.select %284, %281, %282 : vector<3x1x16xi1>, vector<3x1x16xf32>
          %c0_211 = arith.constant 0 : index
          %c0_212 = arith.constant 0 : index
          %c0_213 = arith.constant 0 : index
          %286 = vector.load %arg10[%c0_211, %c0_212, %c0_213] : memref<3x1x16xf32, #tpu.memory_space<vmem>>, vector<3x1x16xf32>
          tpu.vector_store %arg10[%c0_211, %c0_212, %c0_213], %285 {strides = array<i32>} : memref<3x1x16xf32, #tpu.memory_space<vmem>>, vector<3x1x16xf32>,
        } else {
        }
      } else {
      }
    }
    "tpu.trace_start"() <{level = 10 : i32, message = "gid,gjd->gij"}> : () -> ()
    %cst_47 = arith.constant dense<0.000000e+00> : vector<3x16x16xf32>
    %44 = tpu.matmul %0, %1, %cst_47 {dimension_numbers = #tpu.dot_dimension_numbers<[2], [2], [1], [1], [0, 0, 0, 1, 1, 1], [0], [0]>} : vector<3x16x8xf32>, vector<3x16x8xf32>, vector<3x16x16xf32> -> vector<3x16x16xf32>
    "tpu.trace_stop"() : () -> ()
    %45 = vector.broadcast %6 : vector<3x16x1xf32> to vector<3x16x16xf32>
    %46 = vector.broadcast %8 : vector<3x1x16xf32> to vector<3x16x16xf32>
    %47 = arith.addf %45, %46 : vector<3x16x16xf32>
    %cst_48 = arith.constant 2.000000e+00 : f32
    %48 = vector.broadcast %cst_48 : f32 to vector<3x16x16xf32>
    %49 = arith.mulf %48, %44 : vector<3x16x16xf32>
    %50 = arith.subf %47, %49 : vector<3x16x16xf32>
    %cst_49 = arith.constant 0.000000e+00 : f32
    %51 = vector.broadcast %cst_49 : f32 to vector<3x16x16xf32>
    %52 = arith.maximumf %50, %51 : vector<3x16x16xf32>
    %53 = vector.broadcast %2 : vector<3x1x1xf32> to vector<3x16x16xf32>
    %54 = arith.mulf %52, %53 : vector<3x16x16xf32>
    %c0_50 = arith.constant 0 : index
    %c0_51 = arith.constant 0 : index
    %c0_52 = arith.constant 0 : index
    %55 = vector.load %arg5[%c0_50, %c0_51, %c0_52] : memref<3x16x16xf32, #tpu.memory_space<vmem>>, vector<3x16x16xf32>
    tpu.vector_store %arg5[%c0_50, %c0_51, %c0_52], %54 {strides = array<i32>} : memref<3x16x16xf32, #tpu.memory_space<vmem>>, vector<3x16x16xf32>,
    %c0_53 = arith.constant 0 : index
    %c0_54 = arith.constant 0 : index
    %c0_55 = arith.constant 0 : index
    %56 = vector.load %arg5[%c0_53, %c0_54, %c0_55] : memref<3x16x16xf32, #tpu.memory_space<vmem>>, vector<3x16x16xf32>
    %c0_56 = arith.constant 0 : index
    %c0_57 = arith.constant 0 : index
    %c0_58 = arith.constant 0 : index
    %57 = vector.load %arg8[%c0_56, %c0_57, %c0_58] : memref<3x16x1xf32, #tpu.memory_space<vmem>>, vector<3x16x1xf32>
    %c0_59 = arith.constant 0 : index
    %c0_60 = arith.constant 0 : index
    %c0_61 = arith.constant 0 : index
    %58 = vector.load %arg6[%c0_59, %c0_60, %c0_61] : memref<3x16x1xf32, #tpu.memory_space<vmem>>, vector<3x16x1xf32>
    %59 = math.log %58 : vector<3x16x1xf32>
    %cst_62 = arith.constant 5.000000e-01 : f32
    %60 = vector.broadcast %cst_62 : f32 to vector<3x16x1xf32>
    %61 = arith.mulf %60, %59 : vector<3x16x1xf32>
    %62 = arith.subf %57, %61 : vector<3x16x1xf32>
    %c0_63 = arith.constant 0 : index
    %c0_64 = arith.constant 0 : index
    %c0_65 = arith.constant 0 : index
    %63 = vector.load %arg9[%c0_63, %c0_64, %c0_65] : memref<3x1x16xf32, #tpu.memory_space<vmem>>, vector<3x1x16xf32>
    %c0_66 = arith.constant 0 : index
    %c0_67 = arith.constant 0 : index
    %c0_68 = arith.constant 0 : index
    %64 = vector.load %arg7[%c0_66, %c0_67, %c0_68] : memref<3x1x16xf32, #tpu.memory_space<vmem>>, vector<3x1x16xf32>
    %65 = math.log %64 : vector<3x1x16xf32>
    %cst_69 = arith.constant 5.000000e-01 : f32
    %66 = vector.broadcast %cst_69 : f32 to vector<3x1x16xf32>
    %67 = arith.mulf %66, %65 : vector<3x1x16xf32>
    %68 = arith.subf %63, %67 : vector<3x1x16xf32>
    %69 = vector.broadcast %68 : vector<3x1x16xf32> to vector<3x16x16xf32>
    %70 = arith.addf %56, %69 : vector<3x16x16xf32>
    %cst_70 = arith.constant 0.000000e+00 : f32
    %71 = vector.broadcast %cst_70 : f32 to vector<3x16x16xf32>
    %72 = arith.subf %71, %70 : vector<3x16x16xf32>
    %cst_71 = arith.constant 2.000000e+00 : f32
    %73 = vector.broadcast %cst_71 : f32 to vector<3x16x16xf32>
    %74 = arith.mulf %72, %73 : vector<3x16x16xf32>
    %cst_72 = arith.constant 2.77258873 : f32
    %75 = vector.broadcast %cst_72 : f32 to vector<3x16x16xf32>
    %76 = arith.subf %74, %75 : vector<3x16x16xf32>
    %cst_73 = arith.constant dense<0xFF800000> : vector<3x16xf32>
    %77 = vector.multi_reduction <maximumf>, %76, %cst_73 [2] : vector<3x16x16xf32> to vector<3x16xf32>
    %78 = vector.shape_cast %77 : vector<3x16xf32> to vector<3x16x1xf32>
    %79 = vector.broadcast %78 : vector<3x16x1xf32> to vector<3x16x16xf32>
    %80 = arith.subf %76, %79 : vector<3x16x16xf32>
    %81 = math.exp %80 : vector<3x16x16xf32>
    %cst_74 = arith.constant dense<0.000000e+00> : vector<3x16xf32>
    %82 = vector.multi_reduction <add>, %81, %cst_74 [2] : vector<3x16x16xf32> to vector<3x16xf32>
    %83 = vector.shape_cast %82 : vector<3x16xf32> to vector<3x16x1xf32>
    %84 = math.log %83 : vector<3x16x1xf32>
    %85 = arith.addf %84, %78 : vector<3x16x1xf32>
    %cst_75 = arith.constant 5.000000e-01 : f32
    %86 = vector.broadcast %cst_75 : f32 to vector<3x16x1xf32>
    %87 = arith.mulf %86, %85 : vector<3x16x1xf32>
    %cst_76 = arith.constant 2.28945971 : f32
    %88 = vector.broadcast %cst_76 : f32 to vector<3x16x1xf32>
    %89 = arith.subf %87, %88 : vector<3x16x1xf32>
    %90 = vector.broadcast %62 : vector<3x16x1xf32> to vector<3x16x16xf32>
    %91 = arith.addf %56, %90 : vector<3x16x16xf32>
    %cst_77 = arith.constant 0.000000e+00 : f32
    %92 = vector.broadcast %cst_77 : f32 to vector<3x16x16xf32>
    %93 = arith.subf %92, %91 : vector<3x16x16xf32>
    %cst_78 = arith.constant 2.000000e+00 : f32
    %94 = vector.broadcast %cst_78 : f32 to vector<3x16x16xf32>
    %95 = arith.mulf %93, %94 : vector<3x16x16xf32>
    %cst_79 = arith.constant 2.77258873 : f32
    %96 = vector.broadcast %cst_79 : f32 to vector<3x16x16xf32>
    %97 = arith.subf %95, %96 : vector<3x16x16xf32>
    %cst_80 = arith.constant dense<0xFF800000> : vector<3x16xf32>
    %98 = vector.multi_reduction <maximumf>, %97, %cst_80 [1] : vector<3x16x16xf32> to vector<3x16xf32>
    %99 = vector.shape_cast %98 : vector<3x16xf32> to vector<3x1x16xf32>
    %100 = vector.broadcast %99 : vector<3x1x16xf32> to vector<3x16x16xf32>
    %101 = arith.subf %97, %100 : vector<3x16x16xf32>
    %102 = math.exp %101 : vector<3x16x16xf32>
    %cst_81 = arith.constant dense<0.000000e+00> : vector<3x16xf32>
    %103 = vector.multi_reduction <add>, %102, %cst_81 [1] : vector<3x16x16xf32> to vector<3x16xf32>
    %104 = vector.shape_cast %103 : vector<3x16xf32> to vector<3x1x16xf32>
    %105 = math.log %104 : vector<3x1x16xf32>
    %106 = arith.addf %105, %99 : vector<3x1x16xf32>
    %cst_82 = arith.constant 5.000000e-01 : f32
    %107 = vector.broadcast %cst_82 : f32 to vector<3x1x16xf32>
    %108 = arith.mulf %107, %106 : vector<3x1x16xf32>
    %cst_83 = arith.constant 2.28945971 : f32
    %109 = vector.broadcast %cst_83 : f32 to vector<3x1x16xf32>
    %110 = arith.subf %108, %109 : vector<3x1x16xf32>
    %cst_84 = arith.constant dense<0.000000e+00> : vector<3x1xf32>
    %111 = vector.multi_reduction <add>, %89, %cst_84 [1] : vector<3x16x1xf32> to vector<3x1xf32>
    %112 = vector.shape_cast %111 : vector<3x1xf32> to vector<3x1x1xf32>
    %cst_85 = arith.constant 6.250000e-02 : f32
    %113 = vector.broadcast %cst_85 : f32 to vector<3x1x1xf32>
    %114 = arith.mulf %112, %113 : vector<3x1x1xf32>
    %cst_86 = arith.constant dense<0.000000e+00> : vector<3x1xf32>
    %115 = vector.multi_reduction <add>, %110, %cst_86 [2] : vector<3x1x16xf32> to vector<3x1xf32>
    %116 = vector.shape_cast %115 : vector<3x1xf32> to vector<3x1x1xf32>
    %cst_87 = arith.constant 6.250000e-02 : f32
    %117 = vector.broadcast %cst_87 : f32 to vector<3x1x1xf32>
    %118 = arith.mulf %116, %117 : vector<3x1x1xf32>
    %119 = vector.broadcast %89 : vector<3x16x1xf32> to vector<3x16x16xf32>
    %120 = arith.addf %56, %119 : vector<3x16x16xf32>
    %121 = vector.broadcast %110 : vector<3x1x16xf32> to vector<3x16x16xf32>
    %122 = arith.addf %120, %121 : vector<3x16x16xf32>
    %cst_88 = arith.constant 0.000000e+00 : f32
    %123 = vector.broadcast %cst_88 : f32 to vector<3x16x16xf32>
    %124 = arith.subf %123, %122 : vector<3x16x16xf32>
    %cst_89 = arith.constant 2.000000e+00 : f32
    %125 = vector.broadcast %cst_89 : f32 to vector<3x16x16xf32>
    %126 = arith.mulf %124, %125 : vector<3x16x16xf32>
    %cst_90 = arith.constant 10.1240969 : f32
    %127 = vector.broadcast %cst_90 : f32 to vector<3x16x16xf32>
    %128 = arith.subf %126, %127 : vector<3x16x16xf32>
    %129 = math.exp %128 : vector<3x16x16xf32>
    %cst_91 = arith.constant dense<0.000000e+00> : vector<3x16xf32>
    %130 = vector.multi_reduction <add>, %129, %cst_91 [2] : vector<3x16x16xf32> to vector<3x16xf32>
    %131 = vector.shape_cast %130 : vector<3x16xf32> to vector<3x16x1xf32>
    %cst_92 = arith.constant dense<0.000000e+00> : vector<3x1xf32>
    %132 = vector.multi_reduction <add>, %131, %cst_92 [1] : vector<3x16x1xf32> to vector<3x1xf32>
    %133 = vector.shape_cast %132 : vector<3x1xf32> to vector<3x1x1xf32>
    %cst_93 = arith.constant 0.000000e+00 : f32
    %134 = vector.broadcast %cst_93 : f32 to vector<3x1x1xf32>
    %135 = arith.subf %134, %114 : vector<3x1x1xf32>
    %136 = arith.subf %135, %118 : vector<3x1x1xf32>
    %cst_94 = arith.constant 5.000000e-01 : f32
    %137 = vector.broadcast %cst_94 : f32 to vector<3x1x1xf32>
    %138 = arith.mulf %137, %133 : vector<3x1x1xf32>
    %139 = arith.subf %136, %138 : vector<3x1x1xf32>
    %c0_95 = arith.constant 0 : index
    %c0_96 = arith.constant 0 : index
    %c0_97 = arith.constant 0 : index
    %140 = vector.load %arg4[%c0_95, %c0_96, %c0_97] : memref<3x1x1xf32, #tpu.memory_space<vmem>>, vector<3x1x1xf32>
    tpu.vector_store %arg4[%c0_95, %c0_96, %c0_97], %139 {strides = array<i32>} : memref<3x1x1xf32, #tpu.memory_space<vmem>>, vector<3x1x1xf32>,
    return
  }
  func.func @transform_0(%arg0: i32) -> (i32, i32, i32) {
    %c0_i32 = arith.constant 0 : i32
    %c0_i32_0 = arith.constant 0 : i32
    %c0_i32_1 = arith.constant 0 : i32
    return %arg0, %c0_i32, %c0_i32_0 : i32, i32, i32
  }
  func.func @transform_1(%arg0: i32) -> (i32, i32, i32) {
    %c0_i32 = arith.constant 0 : i32
    %c0_i32_0 = arith.constant 0 : i32
    %c0_i32_1 = arith.constant 0 : i32
    return %arg0, %c0_i32, %c0_i32_0 : i32, i32, i32
  }
  func.func @transform_2(%arg0: i32) -> (i32, i32, i32) {
    %c0_i32 = arith.constant 0 : i32
    %c0_i32_0 = arith.constant 0 : i32
    %c0_i32_1 = arith.constant 0 : i32
    return %arg0, %c0_i32, %c0_i32_0 : i32, i32, i32
  }
  func.func @transform_3(%arg0: i32) -> (i32, i32, i32) {
    %c0_i32 = arith.constant 0 : i32
    %c0_i32_0 = arith.constant 0 : i32
    %c0_i32_1 = arith.constant 0 : i32
    return %arg0, %c0_i32, %c0_i32_0 : i32, i32, i32
  }
}

</mosaic_0001>

<bundles_post_ra>
// kernel: tpu_custom_call.1
= control target key start
LH: loop header
LB: loop body
LE: loop exit
PB: predicated region body
PF: predicated region fallthrough
CT: control target
= control target key end

     0   :  { %vm35_vm0 = vcmask 64512   ;;  %v2470_v0 = vmov 0.0|0.0   ;;  %vm708_vm1 = vcmask 0   ;;  %vm3212_vm2 = vcmask 7168   ;;  %s2677_s13 = smov 0   ;;  %s3207_s3 = inlined_call_operand.vmem [shape: f32[3,1,1], index: 3, kind: output, shape index: {}]   ;;  %s3208_s1 = inlined_call_operand.vmem [shape: f32[3,16,8], index: 1, kind: input, shape index: {}]   ;;  %s3209_s0 = inlined_call_operand.vmem [shape: f32[3,16,8], index: 0, kind: input, shape index: {}]   ;;  %s3210_s2 = inlined_call_operand.vmem [shape: f32[3,1,1], index: 2, kind: input, shape index: {}]  }
   0x1   :  { %2259 = vmatprep.subr.bf16.mxu0 %v2470_v0  ;;  %2263 = vmatprep.subr.bf16.mxu1 %v2470_v0  ;;  %v20_v1 = vld [vmem:[%s3208_s1] sm:$0xff]  ;;  %v21_v2 = vld [vmem:[%s3208_s1 + $0x8] sm:$0xff]  ;;  %vm2510_vm3 = vmpackc.low %vm35_vm0, %vm35_vm0  ;;  %vm2471_vm4 = vmmov 0   ;;  %v2472_v8 = vmov 0.0   ;;  %v2473_v9 = vmov 1.0   ;;  %v2474_v15 = vmov 0  }
   0x2   :  { %v54_v3 = vmul.f32 %v20_v1, %v20_v1  ;;  %v55_v4 = vmul.f32 %v21_v2, %v21_v2  ;;  %v22_v6 = vld [vmem:[%s3208_s1 + $0x10] sm:$0xff]  ;;  %v23_v7 = vld [vmem:[%s3208_s1 + $0x18] sm:$0xff]  ;;  %2200 = vmatprep.mubr.msk.f32.mxu0 %vm2471_vm4, %v2472_v8  ;;  %709 = vst.msk [vmem:[#allocation8] sm:$0x1] %vm708_vm1, %v2472_v8  ;;  %710 = vst.msk [vmem:[#allocation8 + $0x1] sm:$0x1] %vm708_vm1, %v2472_v8  ;;  %2207 = vmatprep.mubr.msk.f32.mxu1 %vm2471_vm4, %v2472_v8  ;;  %v552_v44 = vlaneseq }
   0x3   :  { %711 = vst.msk [vmem:[#allocation8 + $0x2] sm:$0x1] %vm708_vm1, %v2472_v8  ;;  %v56_v10 = vmul.f32 %v22_v6, %v22_v6  ;;  %v57_v11 = vmul.f32 %v23_v7, %v23_v7  ;;  %v24_v12 = vld [vmem:[%s3208_s1 + $0x20] sm:$0xff]  ;;  %v25_v13 = vld [vmem:[%s3208_s1 + $0x28] sm:$0xff]  ;;  %2322 = vset.pattern.permute.xlu0 %v2474_v15  ;;  %v2271_v17 = vpack.c.bf16 %v21_v2, %v20_v1  ;;  %v16_v19 = vld [vmem:[%s3209_s0 + $0x10] sm:$0xff]  ;;  %vm3213_vm5 = vcmask 122880  }
   0x4   :  { %659 = vst.msk [vmem:[#allocation3] sm:$0xff] %vm3212_vm2, %v2473_v9  ;;  %660 = vst.msk [vmem:[#allocation3 + $0x8] sm:$0xff] %vm3212_vm2, %v2473_v9  ;;  %v14_v14 = vld [vmem:[%s3209_s0] sm:$0xff]  ;;  %v2260_v16 = vpack.c.bf16 %v55_v4, %v54_v3  ;;  %v15_v18 = vld [vmem:[%s3209_s0 + $0x8] sm:$0xff]  ;;  %2323 = vset.pattern.permute.xlu1 %v2474_v15  ;;  %v31_v23 = vmul.f32 %v16_v19, %v16_v19  ;;  %v58_v25 = vmul.f32 %v24_v12, %v24_v12  ;;  %vm3211_vm6 = vcmask 130048  }
   0x5   :  { %661 = vst.msk [vmem:[#allocation3 + $0x10] sm:$0xff] %vm3212_vm2, %v2473_v9  ;;  %662 = vst.msk [vmem:[#allocation3 + $0x18] sm:$0xff] %vm3212_vm2, %v2473_v9  ;;  %v29_v20 = vmul.f32 %v14_v14, %v14_v14  ;;  %v2264_v21 = vpack.c.bf16 %v57_v11, %v56_v10  ;;  %v17_v22 = vld [vmem:[%s3209_s0 + $0x18] sm:$0xff]  ;;  %v30_v24 = vmul.f32 %v15_v18, %v15_v18  ;;  %v18_v30 = vld [vmem:[%s3209_s0 + $0x20] sm:$0xff]  ;;  %v553_v46 = vshrl.u32 %v552_v44, 7 }
   0x6   :  { %663 = vst.msk [vmem:[#allocation3 + $0x20] sm:$0xff] %vm3212_vm2, %v2473_v9  ;;  %664 = vst.msk [vmem:[#allocation3 + $0x28] sm:$0xff] %vm3212_vm2, %v2473_v9  ;;  %2262 = vmatpush3.bf16.xpose.msk.msra.mxu0 %vm2510_vm3, %v2260_v16  ;;  %v59_v26 = vmul.f32 %v25_v13, %v25_v13  ;;  %v32_v28 = vmul.f32 %v17_v22, %v17_v22  ;;  %v42_v29 = vsel %vm35_vm0, %v31_v23, 0.0  ;;  %v19_v33 = vld [vmem:[%s3209_s0 + $0x28] sm:$0xff]  ;;  %v2117_v41 = vld [vmem:[%s3210_s2 + $0x1] ss:$0 sm:$0xff] }
   0x7   :  { %669 = vst.msk [vmem:[#allocation5] sm:$0xff] %vm3212_vm2, %v2472_v8  ;;  %670 = vst.msk [vmem:[#allocation5 + $0x8] sm:$0xff] %vm3212_vm2, %v2472_v8  ;;  %v36_v27 = vsel %vm35_vm0, %v29_v20, 0.0  ;;  %2266 = vmatpush3.bf16.xpose.msk.msra.mxu1 %vm2510_vm3, %v2264_v21  ;;  %2267 = vmatprep.subr.bf16.mxu0 %v2470_v0  ;;  %v39_v31 = vsel %vm35_vm0, %v30_v24, 0.0  ;;  %v33_v35 = vmul.f32 %v18_v30, %v18_v30  ;;  %v2116_v42 = vld [vmem:[%s3210_s2] ss:$0 sm:$0xff] }
   0x8   :  { %671 = vst.msk [vmem:[#allocation5 + $0x10] sm:$0xff] %vm3212_vm2, %v2472_v8  ;;  %672 = vst.msk [vmem:[#allocation5 + $0x18] sm:$0xff] %vm3212_vm2, %v2472_v8  ;;  %2273 = vmatprep.subr.msk.bf16.mxu1 %vm2510_vm3, %v2271_v17  ;;  %37 = vadd.xlane.f32.xlu0 %v36_v27  ;;  %v2268_v32 = vpack.c.bf16 %v59_v26, %v58_v25  ;;  %v45_v34 = vsel %vm35_vm0, %v32_v28, 0.0  ;;  %v34_v36 = vmul.f32 %v19_v33, %v19_v33  ;;  %v2118_v43 = vld [vmem:[%s3210_s2 + $0x2] ss:$0 sm:$0xff]  ;;  %s2475_s2 = smov 0  }
   0x9   :  { %673 = vst.msk [vmem:[#allocation5 + $0x20] sm:$0xff] %vm3212_vm2, %v2472_v8  ;;  %674 = vst.msk [vmem:[#allocation5 + $0x28] sm:$0xff] %vm3212_vm2, %v2472_v8  ;;  %43 = vadd.xlane.f32.xlu1 %v42_v29  ;;  %v2277_v37 = vpack.c.bf16 %v23_v7, %v22_v6  ;;  %v2283_v38 = vpack.c.bf16 %v25_v13, %v24_v12  ;;  %v48_v39 = vsel %vm35_vm0, %v33_v35, 0.0  ;;  %713 = sst [smem:[#allocation9]] %s2475_s2  ;;  %v2639_v51 = vsub.s32 0, %v553_v46 }
   0xa   :  { %v51_v40 = vsel %vm35_vm0, %v34_v36, 0.0  ;;  %666 = vst.msk [vmem:[#allocation4] sm:$0x1] %vm3213_vm5, %v2473_v9  ;;  %667 = vst.msk [vmem:[#allocation4 + $0x1] sm:$0x1] %vm3213_vm5, %v2473_v9  ;;  %715 = sst [smem:[#allocation10]] %s2475_s2 }
   0xb   :  { %668 = vst.msk [vmem:[#allocation4 + $0x2] sm:$0x1] %vm3213_vm5, %v2473_v9  ;;  %675 = vst.msk [vmem:[#allocation6] sm:$0x1] %vm3213_vm5, %v2472_v8 }
   0xc   :  { %40 = vadd.xlane.f32.xlu0 %v39_v31  ;;  %676 = vst.msk [vmem:[#allocation6 + $0x1] sm:$0x1] %vm3213_vm5, %v2472_v8  ;;  %677 = vst.msk [vmem:[#allocation6 + $0x2] sm:$0x1] %vm3213_vm5, %v2472_v8 }
   0xd   :  { %2201 = vmatmul.mubr.msk.f32.vlgmr.msra.gmra.mrb[0].mxu0 %vm35_vm0, %v2473_v9  ;;  %46 = vadd.xlane.f32.xlu1 %v45_v34 }
   0xe   :  { %2208 = vmatmul.mubr.msk.f32.vlgmr.msra.gmra.mrb[0].mxu1 %vm35_vm0, %v2473_v9  ;;  %2270 = vmatpush3.bf16.xpose.msk.msra.mxu0 %vm2510_vm3, %v2268_v32 }
   0xf   :  { %2276 = vmatpush3.bf16.xpose.msk.msra.mxu1 %vm2510_vm3, %v2271_v17  ;;  %2214 = vmatprep.mubr.msk.f32.mxu0 %vm2471_vm4, %v2472_v8 }
  0x10   :  { %2221 = vmatprep.mubr.msk.f32.mxu1 %vm35_vm0, %v14_v14  ;;  %2279 = vmatprep.subr.msk.bf16.mxu0 %vm2510_vm3, %v2277_v37 }
  0x11   :  { %2285 = vmatprep.subr.msk.bf16.mxu1 %vm2510_vm3, %v2283_v38  ;;  %49 = vadd.xlane.f32.xlu0 %v48_v39 }
  0x12   :  { %52 = vadd.xlane.f32.xlu1 %v51_v40 }
  0x15   :  { %2215 = vmatmul.mubr.msk.f32.vlgmr.msra.gmra.mrb[2].mxu0 %vm35_vm0, %v2473_v9 }
  0x16   :  { %2222 = vmatmul.mubr.msk.f32.vlgmr.msra.gmra.mrb[2].mxu1 %vm35_vm0, %v15_v18  ;;  %2282 = vmatpush3.bf16.xpose.msk.msra.mxu0 %vm2510_vm3, %v2277_v37 }
  0x17   :  { %2288 = vmatpush3.bf16.xpose.msk.msra.mxu1 %vm2510_vm3, %v2283_v38  ;;  %2228 = vmatprep.mubr.msk.f32.mxu0 %vm35_vm0, %v16_v19 }
  0x18   :  { %2235 = vmatprep.mubr.msk.f32.mxu1 %vm35_vm0, %v18_v30 }
  0x1d   :  { %2229 = vmatmul.mubr.msk.f32.vlgmr.msra.gmra.mrb[4].mxu0 %vm35_vm0, %v17_v22 }
  0x1e   :  { %2236 = vmatmul.mubr.msk.f32.vlgmr.msra.gmra.mrb[4].mxu1 %vm35_vm0, %v19_v33 }
  0x23   :  { %608 = vperm.xlu1 %2323, %v2117_v41  }
  0x27   :  { %604 = vperm.xlu0 %2322, %v2116_v42   ;;  %612 = vperm.xlu1 %2323, %v2118_v43  }
  0x95   :  { %v38_v45 = vpop.xlane.xlu0 %37 }
  0x96   :  { %v44_v47 = vpop.xlane.xlu1 %43 }
  0x99   :  { %v41_v53 = vpop.xlane.xlu0 %40 }
  0x9a   :  { %v47_v55 = vpop.xlane.xlu1 %46 }
  0x9e   :  { %v50_v56 = vpop.xlane.xlu0 %49 }
  0x9f   :  { %v53_v63 = vpop.xlane.xlu1 %52 }
  0xa3   :  { %v609_v10 = vpop.permute.xlu1 %608 }
  0xa6   :  { %v605_v5 = vpop.permute.xlu0 %604 }
  0xa7   :  { %v613_v40 = vpop.permute.xlu1 %612 }
  0xe0   :  { %v135_v48 = vpop.f32.mrb[0].mxu0 }
  0xe1   :  { %v211_v49 = vpop.f32.mrb[0].mxu1  ;;  %v2202_v50 = vpop.f32.mrb[1].mxu0  ;;  %v555_v54 = vrot.slane %v135_v48, %v2639_v51 }
  0xe2   :  { %v2209_v52 = vpop.f32.mrb[1].mxu1  ;;  %v559_v3 = vrot.slane %v211_v49, %v2639_v51 }
  0xe3   :  { %v565_v60 = vadd.f32 %v555_v54, %v41_v53  ;;  %v564_v0 = vadd.f32 %v555_v54, %v38_v45 }
  0xe4   :  { %v566_v12 = vadd.f32 %v559_v3, %v44_v47  ;;  %v567_v13 = vadd.f32 %v559_v3, %v47_v55 }
  0xe8   :  { %v287_v57 = vpop.f32.mrb[2].mxu0 }
  0xe9   :  { %v2223_v58 = vpop.f32.mrb[2].mxu1  ;;  %v2216_v59 = vpop.f32.mrb[3].mxu0  ;;  %v563_v6 = vrot.slane %v287_v57, %v2639_v51 }
  0xea   :  { %v571_v61 = vmul.f32 2.0, %v2223_v58  ;;  %v369_v62 = vpop.f32.mrb[3].mxu1 }
  0xeb   :  { %v570_v1 = vmul.f32 2.0, %v369_v62  ;;  %v569_v19 = vadd.f32 %v563_v6, %v53_v63  ;;  %v568_v24 = vadd.f32 %v563_v6, %v50_v56 }
  0xec   :  { %v577_v2 = vsub.f32 %v565_v60, %v571_v61 }
  0xed   :  { %v576_v4 = vsub.f32 %v564_v0, %v570_v1 }
  0xee   :  { %v583_v7 = vmax.f32 %v577_v2, 0.0 }
  0xef   :  { %v582_v8 = vmax.f32 %v576_v4, 0.0 }
  0xf0   :  { %v2644_v9 = vmul.f32 %v605_v5, %v583_v7  ;;  %v2230_v11 = vpop.f32.mrb[4].mxu0 }
  0xf1   :  { %v2646_v14 = vmul.f32 %v605_v5, %v582_v8  ;;  %v573_v16 = vmul.f32 2.0, %v2230_v11  ;;  %v2237_v17 = vpop.f32.mrb[4].mxu1  ;;  %v456_v18 = vpop.f32.mrb[5].mxu0 }
  0xf2   :  { %v622_v20 = vsub.f32 0.0, %v2644_v9  ;;  %v575_v21 = vmul.f32 2.0, %v2237_v17  ;;  %v572_v22 = vmul.f32 2.0, %v456_v18  ;;  %v543_v23 = vpop.f32.mrb[5].mxu1 }
  0xf3   :  { %v621_v25 = vsub.f32 0.0, %v2646_v14  ;;  %v579_v26 = vsub.f32 %v567_v13, %v573_v16  ;;  %v574_v27 = vmul.f32 2.0, %v543_v23 }
  0xf4   :  { %v628_v28 = vmul.f32 2.0, %v622_v20  ;;  %v581_v29 = vsub.f32 %v569_v19, %v575_v21  ;;  %v578_v30 = vsub.f32 %v566_v12, %v572_v22 }
  0xf5   :  { %v627_v31 = vmul.f32 2.0, %v621_v25  ;;  %v585_v32 = vmax.f32 %v579_v26, 0.0  ;;  %v580_v33 = vsub.f32 %v568_v24, %v574_v27 }
  0xf6   :  { %v2120_v34 = vadd.f32 -10.124097, %v628_v28  ;;  %v584_v35 = vmax.f32 %v578_v30, 0.0  ;;  %v587_v36 = vmax.f32 %v581_v29, 0.0 }
  0xf7   :  { %v2119_v37 = vadd.f32 -10.124097, %v627_v31  ;;  %v2650_v38 = vmul.f32 %v609_v10, %v585_v32  ;;  %v586_v39 = vmax.f32 %v580_v33, 0.0 }
  0xf8   :  { %v641_v41 = vmul.f32 1.442695, %v2120_v34  ;;  %v2652_v42 = vmul.f32 %v609_v10, %v584_v35  ;;  %v2654_v43 = vmul.f32 %v613_v40, %v587_v36 }
  0xf9   :  { %v639_v44 = vmul.f32 1.442695, %v2119_v37  ;;  %v624_v45 = vsub.f32 0.0, %v2650_v38  ;;  %v2657_v46 = vmul.f32 %v613_v40, %v586_v39 }
  0xfa   :  { %2324 = vpow2.f32 %v641_v41  ;;  %v623_v47 = vsub.f32 0.0, %v2652_v42  ;;  %v626_v48 = vsub.f32 0.0, %v2654_v43 }
  0xfb   :  { %2326 = vpow2.f32 %v639_v44  ;;  %v630_v49 = vmul.f32 2.0, %v624_v45  ;;  %v625_v50 = vsub.f32 0.0, %v2657_v46 }
  0xfc   :  { %v629_v52 = vmul.f32 2.0, %v623_v47  ;;  %v632_v53 = vmul.f32 2.0, %v626_v48 }
  0xfd   :  { %v2122_v54 = vadd.f32 -10.124097, %v630_v49  ;;  %v631_v55 = vmul.f32 2.0, %v625_v50 }
  0xfe   :  { %v2121_v56 = vadd.f32 -10.124097, %v629_v52  ;;  %v2124_v57 = vadd.f32 -10.124097, %v632_v53 }
  0xff   :  { %v645_v58 = vmul.f32 1.442695, %v2122_v54  ;;  %v2123_v59 = vadd.f32 -10.124097, %v631_v55 }
 0x100   :  { %v643_v60 = vmul.f32 1.442695, %v2121_v56  ;;  %v649_v61 = vmul.f32 1.442695, %v2124_v57 }
 0x101   :  { %2328 = vpow2.f32 %v645_v58  ;;  %v647_v62 = vmul.f32 1.442695, %v2123_v59 }
 0x102   :  { %2330 = vpow2.f32 %v643_v60 }
 0x103   :  { %2332 = vpow2.f32 %v647_v62 }
 0x104   :  { %v2325_v63 = vpop.eup %2324  ;;  %2334 = vpow2.f32 %v649_v61 }
 0x105   :  { %v2327_v0 = vpop.eup %2326  ;;  %653 = vst.msk [vmem:[#allocation2 + $0x8] sm:$0xff] %vm3211_vm6, %v2325_v63  ;;  %v679_v1 = vsel %vm3211_vm6, %v2325_v63, 0.0 }
 0x106   :  { %652 = vst.msk [vmem:[#allocation2] sm:$0xff] %vm3211_vm6, %v2327_v0  ;;  %v678_v2 = vsel %vm3211_vm6, %v2327_v0, 0.0 }
 0x107   :  { %v680_v3 = vadd.f32 %v679_v1, %v678_v2 }
 0x109   :  { %v681_v4 = vrot.slane %v680_v3, 4 }
 0x10b   :  { %v2329_v5 = vpop.eup %2328  ;;  %v682_v6 = vadd.f32 %v681_v4, %v680_v3 }
 0x10c   :  { %v2331_v7 = vpop.eup %2330  ;;  %655 = vst.msk [vmem:[#allocation2 + $0x18] sm:$0xff] %vm3211_vm6, %v2329_v5  ;;  %v688_v8 = vsel %vm3211_vm6, %v2329_v5, 0.0 }
 0x10d   :  { %v2333_v10 = vpop.eup %2332  ;;  %v683_v11 = vrot.slane %v682_v6, 2  ;;  %654 = vst.msk [vmem:[#allocation2 + $0x10] sm:$0xff] %vm3211_vm6, %v2331_v7  ;;  %v687_v12 = vsel %vm3211_vm6, %v2331_v7, 0.0 }
 0x10e   :  { %v2335_v13 = vpop.eup %2334  ;;  %v689_v16 = vadd.f32 %v688_v8, %v687_v12  ;;  %656 = vst.msk [vmem:[#allocation2 + $0x20] sm:$0xff] %vm3211_vm6, %v2333_v10  ;;  %v696_v17 = vsel %vm3211_vm6, %v2333_v10, 0.0 }
 0x10f   :  { %v684_v18 = vadd.f32 %v683_v11, %v682_v6  ;;  %657 = vst.msk [vmem:[#allocation2 + $0x28] sm:$0xff] %vm3211_vm6, %v2335_v13  ;;  %v697_v19 = vsel %vm3211_vm6, %v2335_v13, 0.0 }
 0x110   :  { %v690_v20 = vrot.slane %v689_v16, 4  ;;  %v698_v21 = vadd.f32 %v697_v19, %v696_v17 }
 0x111   :  { %v685_v22 = vrot.slane %v684_v18, 1 }
 0x112   :  { %v691_v23 = vadd.f32 %v690_v20, %v689_v16  ;;  %v699_v24 = vrot.slane %v698_v21, 4 }
 0x113   :  { %v686_v25 = vadd.f32 %v685_v22, %v684_v18 }
 0x114   :  { %v692_v26 = vrot.slane %v691_v23, 2  ;;  %v700_v27 = vadd.f32 %v699_v24, %v698_v21 }
 0x115   :  { %705 = vst.msk [vmem:[#allocation7] sm:$0x1] %vm3213_vm5, %v686_v25 }
 0x116   :  { %v693_v28 = vadd.f32 %v692_v26, %v691_v23  ;;  %v701_v29 = vrot.slane %v700_v27, 2 }
 0x118   :  { %v694_v30 = vrot.slane %v693_v28, 1  ;;  %v702_v31 = vadd.f32 %v701_v29, %v700_v27 }
 0x11a   :  { %v695_v32 = vadd.f32 %v694_v30, %v693_v28  ;;  %v703_v33 = vrot.slane %v702_v31, 1 }
 0x11c   :  { %706 = vst.msk [vmem:[#allocation7 + $0x1] sm:$0x1] %vm3213_vm5, %v695_v32  ;;  %v704_v34 = vadd.f32 %v703_v33, %v702_v31 }
 0x11e   :  { %707 = vst.msk [vmem:[#allocation7 + $0x2] sm:$0x1] %vm3213_vm5, %v704_v34 }
 0x11f LB: > { %s722_s14 = sld [smem:[#allocation9]]  ;;  %s2468_s13 = sphi %s2677_s13, %s721_s13  }
 0x125   : > { %p2125_p0 = scmp.ne.s32.totalorder %s722_s14, 0 }
 0x126   : > { %v740_v35 = vld [vmem:[#allocation7 + $0x1] sm:$0x1] (!%p2125_p0)  ;;  %v739_v36 = vld [vmem:[#allocation7] sm:$0x1] (!%p2125_p0)  ;;  %v2682_v37 = vld [vmem:[#allocation2 + $0x28] sm:$0xff] (!%p2125_p0)  ;;  %vm3216_vm6 = vcmask (!%p2125_p0), 130048  }
 0x127   : > { %726 = sbr.rel (%p2125_p0) target bundleno = 1390 (0x56e), region = 24  ;;  %2338 = vrcp.f32 (!%p2125_p0), %v740_v35  ;;  %v741_v39 = vld [vmem:[#allocation7 + $0x2] sm:$0x1] (!%p2125_p0)  ;;  %v2684_v40 = vld [vmem:[#allocation2 + $0x20] sm:$0xff] (!%p2125_p0)  ;;  %v2690_v49 = vld [vmem:[#allocation2 + $0x10] sm:$0xff] (!%p2125_p0)  ;;  %v2476_v10 = vmov (!%p2125_p0), 0.0|0.0  }
 0x128   : > { %2340 = vrcp.f32 (!%p2125_p0), %v739_v36  ;;  %v2296_v41 = vpack.c.bf16 (!%p2125_p0), %v2682_v37, %v2684_v40  ;;  %v2694_v52 = vld [vmem:[#allocation2 + $0x18] sm:$0xff] (!%p2125_p0)  ;;  %v2698_v54 = vld [vmem:[#allocation2] sm:$0xff] (!%p2125_p0)  ;;  %v2700_v55 = vld [vmem:[#allocation2 + $0x8] sm:$0xff] (!%p2125_p0)  ;;  %2289 = vmatprep.subr.bf16.mxu0 (!%p2125_p0), %v2476_v10  ;;  %2292 = vmatprep.subr.bf16.mxu1 (!%p2125_p0), %v2476_v10  ;;  %vm2477_vm7 = vmmov (!%p2125_p0), 0   ;;  %v2478_v11 = vmov (!%p2125_p0), 0.0  }
 0x129   : > { %2342 = vrcp.f32 (!%p2125_p0), %v741_v39  ;;  %v2290_v7 = vpack.c.bf16 (!%p2125_p0), %v2700_v55, %v2698_v54  ;;  %v2293_v8 = vpack.c.bf16 (!%p2125_p0), %v2694_v52, %v2690_v49  ;;  %2242 = vmatprep.mubr.msk.f32.mxu0 (!%p2125_p0), %vm2477_vm7, %v2478_v11  ;;  %2249 = vmatprep.mubr.msk.f32.mxu1 (!%p2125_p0), %vm2477_vm7, %v2478_v11  ;;  %v2728_v12 = vld [vmem:[#allocation8 + $0x1] sm:$0x1] (!%p2125_p0)  ;;  %v2730_v13 = vld [vmem:[#allocation8] sm:$0x1] (!%p2125_p0)  ;;  %v2479_v19 = vmov (!%p2125_p0), 0   ;;  %v1209_v29 = vld [vmem:[#allocation3 + $0x10] sm:$0xff] (!%p2125_p0) }
 0x12a   : > { %vm737_vm8 = vcmp.lt.f32.partialorder (!%p2125_p0), %v2728_v12, 0.5  ;;  %vm736_vm9 = vcmp.lt.f32.partialorder (!%p2125_p0), %v2730_v13, 0.5  ;;  %v2744_v23 = vld [vmem:[#allocation8 + $0x2] sm:$0x1] (!%p2125_p0)  ;;  %v1207_v33 = vld [vmem:[#allocation3] sm:$0xff] (!%p2125_p0)  ;;  %vm3221_vm2 = vcmask (!%p2125_p0), 7168  }
 0x12b   : > { %2291 = vmatpush3.bf16.msra.mxu0 (!%p2125_p0), %v2290_v7  ;;  %2294 = vmatpush3.bf16.msra.mxu1 (!%p2125_p0), %v2293_v8  ;;  %v2737_v20 = vsel (!%p2125_p0), %vm737_vm8, 1, %v2479_v19  ;;  %v2742_v22 = vsel (!%p2125_p0), %vm736_vm9, 1, %v2479_v19  ;;  %vm738_vm10 = vcmp.lt.f32.partialorder (!%p2125_p0), %v2744_v23, 0.5  ;;  %vm3222_vm5 = vcmask (!%p2125_p0), 122880  }
 0x12c   : > { %2295 = vmatprep.subr.bf16.mxu0 (!%p2125_p0), %v2476_v10  ;;  %v1223_v24 = vrot.slane (!%p2125_p0), %v2737_v20, %v2639_v51  ;;  %v1219_v26 = vrot.slane (!%p2125_p0), %v2742_v22, %v2639_v51  ;;  %v2762_v36 = vsel (!%p2125_p0), %vm738_vm10, 1, %v2479_v19  ;;  %v1211_v10 = vld [vmem:[#allocation3 + $0x20] sm:$0xff] (!%p2125_p0) }
 0x12e   : > { %vm2751_vm11 = vcmp.eq.s32.totalorder %v1223_v24, 1  ;;  %vm2755_vm12 = vcmp.eq.s32.totalorder %v1219_v26, 1 }
 0x131   : > { %v2339_v44 = vpop.eup %2338 }
 0x132   : > { %v2341_v45 = vpop.eup %2340  ;;  %v2688_v47 = vmul.f32 0.0625, %v2339_v44 }
 0x133   : > { %v2343_v48 = vpop.eup %2342  ;;  %v2692_v50 = vmul.f32 0.0625, %v2341_v45 }
 0x134   : > { %v766_v53 = vrot.slane %v2688_v47, %v2639_v51  ;;  %v2702_v56 = vmul.f32 0.0625, %v2343_v48 }
 0x135   : > { %v752_v57 = vrot.slane %v2692_v50, %v2639_v51 }
 0x136   : > { %v768_v58 = vmul.f32 %v766_v53, %v2690_v49  ;;  %v769_v59 = vmul.f32 %v766_v53, %v2694_v52  ;;  %v780_v60 = vrot.slane %v2702_v56, %v2639_v51  ;;  %v1210_v53 = vld [vmem:[#allocation3 + $0x18] sm:$0xff] }
 0x137   : > { %v754_v61 = vmul.f32 %v752_v57, %v2698_v54  ;;  %v755_v62 = vmul.f32 %v752_v57, %v2700_v55 }
 0x138   : > { %v770_v63 = vsel %vm3216_vm6, %v768_v58, 0.0  ;;  %v773_v1 = vsel %vm3216_vm6, %v769_v59, 0.0  ;;  %v783_v2 = vmul.f32 %v780_v60, %v2682_v37  ;;  %v782_v4 = vmul.f32 %v780_v60, %v2684_v40  ;;  %v1208_v59 = vld [vmem:[#allocation3 + $0x8] sm:$0xff] }
 0x139   : > { %771 = vadd.xlane.f32.xlu1 %v770_v63  ;;  %v756_v0 = vsel %vm3216_vm6, %v754_v61, 0.0  ;;  %v759_v3 = vsel %vm3216_vm6, %v755_v62, 0.0  ;;  %v1227_v60 = vrot.slane %v2762_v36, %v2639_v51 }
 0x13a   : > { %757 = vadd.xlane.f32.xlu0 %v756_v0  ;;  %v787_v5 = vsel %vm3216_vm6, %v783_v2, 0.0  ;;  %v784_v6 = vsel %vm3216_vm6, %v782_v4, 0.0 }
 0x13b   : > { %vm1230_vm13 = vcmp.eq.s32.totalorder %v1227_v60, 1  ;;  %v1181_v60 = vand.u32 2147483647, %v2688_v47 }
 0x13d   : > { %774 = vadd.xlane.f32.xlu1 %v773_v1 }
 0x13e   : > { %760 = vadd.xlane.f32.xlu0 %v759_v3 }
 0x141   : > { %788 = vadd.xlane.f32.xlu1 %v787_v5  ;;  %v1212_v5 = vld [vmem:[#allocation3 + $0x28] sm:$0xff] }
 0x142   : > { %785 = vadd.xlane.f32.xlu0 %v784_v6 }
 0x1c6   : > { %v772_v16 = vpop.xlane.xlu1 %771 }
 0x1c7   : > { %2344 = vrcp.f32 %v772_v16  ;;  %v758_v17 = vpop.xlane.xlu0 %757 }
 0x1c8   : > { %2346 = vrcp.f32 %v758_v17 }
 0x1ca   : > { %v775_v18 = vpop.xlane.xlu1 %774 }
 0x1cb   : > { %2348 = vrcp.f32 %v775_v18  ;;  %v761_v21 = vpop.xlane.xlu0 %760 }
 0x1cc   : > { %2350 = vrcp.f32 %v761_v21 }
 0x1ce   : > { %v789_v25 = vpop.xlane.xlu1 %788 }
 0x1cf   : > { %2352 = vrcp.f32 %v789_v25  ;;  %v786_v27 = vpop.xlane.xlu0 %785 }
 0x1d0   : > { %2354 = vrcp.f32 %v786_v27 }
 0x1d1   : > { %v2345_v28 = vpop.eup %2344 }
 0x1d2   : > { %v2347_v31 = vpop.eup %2346  ;;  %v795_v32 = vmul.f32 0.0625, %v2345_v28 }
 0x1d3   : > { %v791_v35 = vmul.f32 0.0625, %v2347_v31 }
 0x1d4   : > { %v1149_v39 = vand.u32 2147483647, %v795_v32  ;;  %907 = vxpose.xlu1.b32.start [1/2] (short) (narrow) %v795_v32, 8  ;;  %v1233_v44 = vsel %vm2751_vm11, %v795_v32, %v1209_v29  ;;  %v1180_v32 = vand.u32 2147483647, %v2692_v50 }
 0x1d5   : > { %v2349_v45 = vpop.eup %2348  ;;  %802 = vxpose.xlu0.b32.start [1/2] (short) (narrow) %v791_v35, 8  ;;  %v1231_v48 = vsel %vm2755_vm12, %v791_v35, %v1207_v33  ;;  %1239 = vst.msk [vmem:[#allocation3 + $0x10] sm:$0xff] %vm3221_vm2, %v1233_v44  ;;  %v1147_v61 = vand.u32 2147483647, %v791_v35 }
 0x1d6   : > { %v2351_v57 = vpop.eup %2350  ;;  %v797_v58 = vmul.f32 0.0625, %v2349_v45  ;;  %1237 = vst.msk [vmem:[#allocation3] sm:$0xff] %vm3221_vm2, %v1231_v48  ;;  %v1162_v63 = vsel %vm3221_vm2, %v1149_v39, -inf  ;;  %v1183_v33 = vsel %vm3222_vm5, %v1180_v32, -inf }
 0x1d7   : > { %v793_v62 = vmul.f32 0.0625, %v2351_v57  ;;  %v1153_v16 = vsel %vm3221_vm2, %v1147_v61, -inf }
 0x1d8   : > { %v1150_v0 = vand.u32 2147483647, %v797_v58  ;;  %908 = vxpose.xlu1.b32.end [2/2] (short) (narrow) %v797_v58, 8  ;;  %v1234_v1 = vsel %vm2751_vm11, %v797_v58, %v1210_v53 }
 0x1d9   : > { %v2353_v2 = vpop.eup %2352  ;;  %v1148_v3 = vand.u32 2147483647, %v793_v62  ;;  %803 = vxpose.xlu0.b32.end [2/2] (short) (narrow) %v793_v62, 8  ;;  %v1232_v4 = vsel %vm2755_vm12, %v793_v62, %v1208_v59  ;;  %1240 = vst.msk [vmem:[#allocation3 + $0x18] sm:$0xff] %vm3221_vm2, %v1234_v1  ;;  %v1186_v1 = vsel %vm3222_vm5, %v1181_v60, -inf  ;;  %vm2480_vm12 = vmmov 1  }
 0x1da   : > { %v2355_v6 = vpop.eup %2354  ;;  %v1163_v7 = vsel %vm3221_vm2, %v1150_v0, -inf  ;;  %v801_v8 = vmul.f32 0.0625, %v2353_v2  ;;  %1238 = vst.msk [vmem:[#allocation3 + $0x8] sm:$0xff] %vm3221_vm2, %v1232_v4 }
 0x1db   : > { %v1154_v17 = vsel %vm3221_vm2, %v1148_v3, -inf  ;;  %v799_v18 = vmul.f32 0.0625, %v2355_v6  ;;  %v1164_v21 = vmax.f32 %v1162_v63, %v1163_v7  ;;  %v1182_v6 = vand.u32 2147483647, %v2702_v56 }
 0x1dc   : > { %v1152_v24 = vand.u32 2147483647, %v801_v8  ;;  %v1155_v25 = vmax.f32 %v1153_v16, %v1154_v17  ;;  %v1236_v26 = vsel %vm1230_vm13, %v801_v8, %v1212_v5 }
 0x1dd   : > { %v1151_v27 = vand.u32 2147483647, %v799_v18  ;;  %1012 = vxpose.xlu0.b32.start [1/2] (short) (narrow) %v799_v18, 8  ;;  %v1235_v28 = vsel %vm1230_vm13, %v799_v18, %v1211_v10  ;;  %1242 = vst.msk [vmem:[#allocation3 + $0x28] sm:$0xff] %vm3221_vm2, %v1236_v26  ;;  %v1165_v16 = vrot.slane %v1164_v21, 4 }
 0x1de   : > { %v1172_v29 = vsel %vm3221_vm2, %v1152_v24, -inf  ;;  %1241 = vst.msk [vmem:[#allocation3 + $0x20] sm:$0xff] %vm3221_vm2, %v1235_v28  ;;  %v1156_v10 = vrot.slane %v1155_v25, 4 }
 0x1df   : > { %v1171_v30 = vsel %vm3221_vm2, %v1151_v27, -inf  ;;  %v1166_v18 = vmax.f32 %v1164_v21, %v1165_v16 }
 0x1e0   : > { %v1173_v31 = vmax.f32 %v1171_v30, %v1172_v29  ;;  %v1157_v17 = vmax.f32 %v1155_v25, %v1156_v10 }
 0x1e1   : > { %1013 = vxpose.xlu0.b32.end [2/2] (short) (narrow) %v801_v8, 8  ;;  %v1189_v8 = vsel %vm3222_vm5, %v1182_v6, -inf  ;;  %v1167_v26 = vrot.slane %v1166_v18, 2 }
 0x1e2   : > { %v1158_v24 = vrot.slane %v1157_v17, 2  ;;  %v1174_v27 = vrot.slane %v1173_v31, 4 }
 0x1e3   : > { %v1168_v29 = vmax.f32 %v1166_v18, %v1167_v26 }
 0x1e4   : > { %v1159_v28 = vmax.f32 %v1157_v17, %v1158_v24  ;;  %v1175_v30 = vmax.f32 %v1173_v31, %v1174_v27 }
 0x1e6   : > { %v1160_v32 = vrot.slane %v1159_v28, 1 }
 0x1f6   : > { %2337 = vset.pattern.permute.xlu1 %v2479_v19 }
 0x1ff   : > { %1184 = vmax.xlane.f32.xlu1 %v1183_v33 }
 0x20a   : > { %2336 = vset.pattern.permute.xlu0 %v2479_v19 }
 0x254   : > { %v923_v34 = vpop.trf.xlu1 }
 0x255   : > { %v818_v35 = vpop.trf.xlu0  ;;  %2250 = vmatmul.mubr.msk.f32.vlgmr.msra.gmra.mrb[0].mxu1 %vm3216_vm6, %v923_v34  ;;  %v1169_v34 = vrot.slane %v1168_v29, 1 }
 0x256   : > { %2243 = vmatmul.mubr.msk.f32.vlgmr.msra.gmra.mrb[0].mxu0 %vm3216_vm6, %v818_v35  ;;  %v1176_v35 = vrot.slane %v1175_v30, 2 }
 0x257   : > { %2297 = vmatpush3.bf16.msra.mxu0 %v2296_v41  ;;  %2256 = vmatprep.mubr.msk.f32.mxu0 %vm2477_vm7, %v2478_v11  ;;  %v1170_v21 = vmax.f32 %v1168_v29, %v1169_v34 }
 0x258   : > { %v1177_v25 = vmax.f32 %v1175_v30, %v1176_v35 }
 0x25d   : > { %v1028_v39 = vpop.trf.xlu0 }
 0x25e   : > { %2257 = vmatmul.mubr.msk.f32.vlgmr.msra.gmra.mrb[2].mxu0 %vm3216_vm6, %v1028_v39  ;;  %v1161_v39 = vmax.f32 %v1159_v28, %v1160_v32 }
 0x28c   : > { %v1185_v33 = vpop.xlane.xlu1 %1184 }
 0x328   : > { %v2798_v44 = vpop.f32.mrb[0].mxu1 }
 0x329   : > { %v2800_v45 = vpop.f32.mrb[0].mxu0  ;;  %v1118_v19 = vmul.f32 %v2798_v44, %v2688_v47  ;;  %v2251_v48 = vpop.f32.mrb[1].mxu1 }
 0x32a   : > { %v1117_v53 = vmul.f32 %v2800_v45, %v2692_v50  ;;  %v2244_v57 = vpop.f32.mrb[1].mxu0 }
 0x32b   : > { %v2130_v58 = vadd.f32 -0.0625, %v1118_v19  ;;  %v1192_v57 = vmax.f32 %v1161_v39, %v1185_v33 }
 0x32c   : > { %v2129_v41 = vadd.f32 -0.0625, %v1117_v53 }
 0x32d   : > { %v1124_v59 = vand.u32 2147483647, %v2130_v58  ;;  %vm2821_vm11 = vcmp.gt.f32.partialorder %v1192_v57, 100.0 }
 0x32e   : > { %v1123_v61 = vand.u32 2147483647, %v2129_v41 }
 0x32f   : > { %v1129_v62 = vsel %vm3222_vm5, %v1124_v59, -inf }
 0x330   : > { %1130 = vmax.xlane.f32.xlu0 %v1129_v62  ;;  %v1126_v63 = vsel %vm3222_vm5, %v1123_v61, -inf  ;;  %v1288_v61 = vld [vmem:[#allocation8] sm:$0x1] }
 0x331   : > { %1127 = vmax.xlane.f32.xlu1 %v1126_v63  ;;  %v2809_v0 = vpop.f32.mrb[2].mxu0  ;;  %v1289_v63 = vld [vmem:[#allocation8 + $0x1] sm:$0x1] }
 0x332   : > { %v1119_v2 = vmul.f32 %v2809_v0, %v2702_v56  ;;  %v2258_v3 = vpop.f32.mrb[3].mxu0 }
 0x334   : > { %1187 = vmax.xlane.f32.xlu0 %v1186_v1  ;;  %v2131_v4 = vadd.f32 -0.0625, %v1119_v2  ;;  %v1178_v1 = vrot.slane %v1177_v25, 1 }
 0x336   : > { %v1125_v5 = vand.u32 2147483647, %v2131_v4  ;;  %v1179_v6 = vmax.f32 %v1177_v25, %v1178_v1 }
 0x338   : > { %v1132_v7 = vsel %vm3222_vm5, %v1125_v5, -inf }
 0x339   : > { %1133 = vmax.xlane.f32.xlu1 %v1132_v7  ;;  %v1290_v7 = vld [vmem:[#allocation8 + $0x2] sm:$0x1] }
 0x33d   : > { %1190 = vmax.xlane.f32.xlu1 %v1189_v8 }
 0x3bd   : > { %v1131_v19 = vpop.xlane.xlu0 %1130 }
 0x3be   : > { %v1128_v48 = vpop.xlane.xlu1 %1127  ;;  %vm1136_vm14 = vcmp.lt.f32.partialorder %v1131_v19, 0.0001  ;;  %v1139_v53 = vmul.f32 16.0, %v1131_v19 }
 0x3bf   : > { %vm1135_vm15 = vcmp.lt.f32.partialorder %v1128_v48, 0.0001  ;;  %v1138_v58 = vmul.f32 16.0, %v1128_v48 }
 0x3c0   : > { %vm1142_vm0 = vcmp.lt.f32.partialorder %v1139_v53, 0.0001 }
 0x3c1   : > { %vm1141_vm3 = vcmp.lt.f32.partialorder %v1138_v58, 0.0001  ;;  %vm2817_vm4 = vmor %vm1136_vm14, %vm1142_vm0  ;;  %v1188_v31 = vpop.xlane.xlu0 %1187 }
 0x3c2   : > { %vm1144_vm7 = vmor %vm1135_vm15, %vm1141_vm3  ;;  %v1193_v59 = vmax.f32 %v1170_v21, %v1188_v31  ;;  %v1277_v31 = vld [vmem:[#allocation7 + $0x1] sm:$0x1] }
 0x3c3   : > { %vm2826_vm13 = vmxor %vm1144_vm7, %vm2480_vm12 }
 0x3c4   : > { %vm1201_vm14 = vmand %vm2826_vm13, %vm2821_vm11  ;;  %vm1199_vm0 = vcmp.gt.f32.partialorder %v1193_v59, 100.0  ;;  %vm3235_vm11 = vcmask 122880  }
 0x3c5   : > { %vm1285_vm15 = vmand %vm736_vm9, %vm1144_vm7 }
 0x3c6   : > { %v1291_v2 = vsel %vm1285_vm15, 1.0, %v1288_v61  ;;  %vm1286_vm3 = vmand %vm737_vm8, %vm2817_vm4  ;;  %v1134_v3 = vpop.xlane.xlu1 %1133 }
 0x3c7   : > { %1294 = vst.msk [vmem:[#allocation8] sm:$0x1] %vm708_vm1, %v1291_v2  ;;  %v1292_v4 = vsel %vm1286_vm3, 1.0, %v1289_v63  ;;  %vm1196_vm6 = vmxor %vm2817_vm4, %vm2480_vm12  ;;  %v1140_v5 = vmul.f32 16.0, %v1134_v3  ;;  %vm1137_vm15 = vcmp.lt.f32.partialorder %v1134_v3, 0.0001 }
 0x3c8   : > { %1295 = vst.msk [vmem:[#allocation8 + $0x1] sm:$0x1] %vm708_vm1, %v1292_v4  ;;  %vm1202_vm2 = vmand %vm1196_vm6, %vm1199_vm0  ;;  %v1297_v10 = vsel %vm708_vm1, %v1291_v2, inf  ;;  %v1298_v16 = vsel %vm708_vm1, %v1292_v4, inf  ;;  %v1276_v63 = vld [vmem:[#allocation7] sm:$0x1] }
 0x3c9   : > { %vm2847_vm7 = vmand %vm737_vm8, %vm1202_vm2  ;;  %vm1143_vm5 = vcmp.lt.f32.partialorder %v1140_v5, 0.0001  ;;  %v1300_v26 = vmin.f32 %v1297_v10, %v1298_v16  ;;  %v1245_v10 = vld [vmem:[#allocation4 + $0x2] sm:$0x1]  ;;  %v1278_v16 = vld [vmem:[#allocation7 + $0x2] sm:$0x1] }
 0x3ca   : > { %v1315_v17 = vsel %vm2847_vm7, 1.0, %v2478_v11  ;;  %vm1146_vm4 = vmor %vm1137_vm15, %vm1143_vm5  ;;  %v1191_v18 = vpop.xlane.xlu1 %1190 }
 0x3cb   : > { %vm1287_vm6 = vmand %vm738_vm10, %vm1146_vm4  ;;  %v1194_v12 = vmax.f32 %v1179_v6, %v1191_v18  ;;  %v1318_v27 = vsel %vm708_vm1, %v1315_v17, -inf }
 0x3cc   : > { %vm1197_vm2 = vmxor %vm1146_vm4, %vm2480_vm12  ;;  %v1293_v24 = vsel %vm1287_vm6, 1.0, %v1290_v7 }
 0x3cd   : > { %vm1200_vm8 = vcmp.gt.f32.partialorder %v1194_v12, 100.0  ;;  %1296 = vst.msk [vmem:[#allocation8 + $0x2] sm:$0x1] %vm708_vm1, %v1293_v24  ;;  %v1299_v28 = vsel %vm708_vm1, %v1293_v24, inf  ;;  %vm2869_vm5 = vmand %vm736_vm9, %vm1201_vm14 }
 0x3ce   : > { %vm1203_vm12 = vmand %vm1197_vm2, %vm1200_vm8  ;;  %v1301_v30 = vmin.f32 %v1300_v26, %v1299_v28  ;;  %v1314_v32 = vsel %vm2869_vm5, 1.0, %v2478_v11 }
 0x3cf   : > { %vm2878_vm0 = vmand %vm738_vm10, %vm1203_vm12  ;;  %v1317_v34 = vsel %vm708_vm1, %v1314_v32, -inf }
 0x3d0   : > { %1302 = vmin.xlane.f32.xlu0 %v1301_v30  ;;  %v1316_v13 = vsel %vm2878_vm0, 1.0, %v2478_v11  ;;  %v1320_v35 = vmax.f32 %v1317_v34, %v1318_v27  ;;  %v1244_v11 = vld [vmem:[#allocation4 + $0x1] sm:$0x1]  ;;  %vm3236_vm13 = vmmov %vm3235_vm11 }
 0x3d1   : > { %v1319_v39 = vsel %vm708_vm1, %v1316_v13, -inf  ;;  %vm3237_vm14 = vmmov %vm3235_vm11 }
 0x3d2   : > { %v1321_v19 = vmax.f32 %v1320_v35, %v1319_v39  ;;  %vm3238_vm3 = vmmov %vm3235_vm11 }
 0x3d3   : > { %vm3239_vm4 = vmmov %vm3238_vm3 }
 0x3d4   : > { %1322 = vmax.xlane.f32.xlu1 %v1321_v19  ;;  %vm3240_vm6 = vmmov %vm3238_vm3 }
 0x3e5   : > { %1254 = vperm.xlu1 %2337, %v2737_v20   ;;  %v1243_v20 = vld [vmem:[#allocation4] sm:$0x1] }
 0x3e6   : > { %1247 = vperm.xlu0 %2336, %v2742_v22  }
 0x3e9   : > { %1261 = vperm.xlu1 %2337, %v2762_v36  }
 0x45d   : > { %v1303_v23 = vpop.xlane.xlu0 %1302 }
 0x45e   : > { %v1304_v48 = vrot.slane %v1303_v23, 4 }
 0x460   : > { %v1305_v53 = vmin.f32 %v1303_v23, %v1304_v48 }
 0x461   : > { %v1323_v57 = vpop.xlane.xlu1 %1322 }
 0x462   : > { %v1306_v58 = vrot.slane %v1305_v53, 2  ;;  %v1324_v21 = vrot.slane %v1323_v57, 4 }
 0x464   : > { %v1325_v25 = vmax.f32 %v1323_v57, %v1324_v21  ;;  %v1307_v41 = vmin.f32 %v1305_v53, %v1306_v58 }
 0x465   : > { %v1255_v59 = vpop.permute.xlu1 %1254  ;;  %v1248_v60 = vpop.permute.xlu0 %1247 }
 0x466   : > { %v1326_v61 = vrot.slane %v1325_v25, 2  ;;  %v1259_v62 = vrot.slane %v1255_v59, %v2639_v51  ;;  %v1252_v22 = vrot.slane %v1248_v60, %v2639_v51  ;;  %v1308_v36 = vrot.slane %v1307_v41, 1 }
 0x468   : > { %vm1268_vm9 = vcmp.eq.s32.totalorder %v1259_v62, 1  ;;  %vm1267_vm10 = vcmp.eq.s32.totalorder %v1252_v22, 1  ;;  %v1309_v1 = vmin.f32 %v1307_v41, %v1308_v36  ;;  %v1327_v2 = vmax.f32 %v1325_v25, %v1326_v61 }
 0x469   : > { %v1271_v3 = vsel %vm1268_vm9, %v2688_v47, %v1244_v11  ;;  %v1280_v4 = vsel %vm1268_vm9, %v2798_v44, %v1277_v31  ;;  %v1270_v5 = vsel %vm1267_vm10, %v2692_v50, %v1243_v20  ;;  %v1279_v6 = vsel %vm1267_vm10, %v2800_v45, %v1276_v63  ;;  %v1262_v7 = vpop.permute.xlu1 %1261 }
 0x46a   : > { %1274 = vst.msk [vmem:[#allocation4 + $0x1] sm:$0x1] %vm3235_vm11, %v1271_v3  ;;  %v1266_v17 = vrot.slane %v1262_v7, %v2639_v51  ;;  %v1328_v47 = vrot.slane %v1327_v2, 1 }
 0x46b   : > { %1283 = vst.msk [vmem:[#allocation7 + $0x1] sm:$0x1] %vm3236_vm13, %v1280_v4 }
 0x46c   : > { %1273 = vst.msk [vmem:[#allocation4] sm:$0x1] %vm3237_vm14, %v1270_v5  ;;  %vm1269_vm15 = vcmp.eq.s32.totalorder %v1266_v17, 1  ;;  %v1329_v44 = vmax.f32 %v1327_v2, %v1328_v47 }
 0x46d   : > { %1282 = vst.msk [vmem:[#allocation7] sm:$0x1] %vm3238_vm3, %v1279_v6  ;;  %v1272_v50 = vsel %vm1269_vm15, %v2702_v56, %v1245_v10  ;;  %v1281_v45 = vsel %vm1269_vm15, %v2809_v0, %v1278_v16 }
 0x46e   : > { %2298 = vpush %v1309_v1 }
 0x46f   : > { %1275 = vst.msk [vmem:[#allocation4 + $0x2] sm:$0x1] %vm3239_vm4, %v1272_v50 }
 0x470   : > { %1284 = vst.msk [vmem:[#allocation7 + $0x2] sm:$0x1] %vm3240_vm6, %v1281_v45 }
 0x471   : > { %2300 = vpush %v1329_v44 }
 0x49f   : > { %s2299_s15 = spop %2298 }
 0x4a0   : > { %p1311_p1 = scmp.gt.f32.partialorder %s2299_s15, 0.5 }
 0x4a2   : > { %s1312_s16 = scalar_select %p1311_p1, 1, 0 }
 0x4a3   : > { %s2301_s17 = spop %2300 }
 0x4a4   : > { %1313 = sst [smem:[#allocation9]] %s1312_s16  ;;  %p1331_p2 = scmp.gt.f32.partialorder %s2301_s17, 0.5 }
 0x4a6   : > { %s1332_s18 = scalar_select %p1331_p2, 1, 0 }
 0x4a8   : > { %1333 = sst [smem:[#allocation10]] %s1332_s18  ;;  %p2132_p3 = scmp.ne.s32.totalorder %s1332_s18, 1 }
 0x4a9   : > { %v1339_v18 = vld [vmem:[#allocation3] sm:$0xff] (!%p2132_p3)  ;;  %v1340_v12 = vld [vmem:[#allocation3 + $0x8] sm:$0xff] (!%p2132_p3)  ;;  %v2481_v56 = vmov (!%p2132_p3), 0   ;;  %v1341_v26 = vld [vmem:[#allocation3 + $0x10] sm:$0xff] (!%p2132_p3) }
 0x4aa   : > { %1338 = sbr.rel (%p2132_p3) target bundleno = 1390 (0x56e), region = 28  ;;  %2356 = vset.pattern.permute.xlu0 (!%p2132_p3), %v2481_v56  ;;  %v1378_v0 = vsel (!%p2132_p3), %vm2869_vm5, 1, %v2481_v56  ;;  %v1379_v24 = vsel (!%p2132_p3), %vm2847_vm7, 1, %v2481_v56  ;;  %v1342_v27 = vld [vmem:[#allocation3 + $0x18] sm:$0xff] (!%p2132_p3)  ;;  %2357 = vset.pattern.permute.xlu1 (!%p2132_p3), %v2481_v56  ;;  %v1380_v28 = vsel (!%p2132_p3), %vm2878_vm0, 1, %v2481_v56  ;;  %2358 = vlog2.f32 (!%p2132_p3), %v1340_v12  ;;  %v1344_v8 = vld [vmem:[#allocation3 + $0x28] sm:$0xff] (!%p2132_p3) }
 0x4ab   : > { %1418 = vperm.xlu0 (!%p2132_p3), %2356, %v1378_v0   ;;  %v2912_v30 = vrot.slane (!%p2132_p3), %v1378_v0, %v2639_v51  ;;  %v2915_v32 = vrot.slane (!%p2132_p3), %v1379_v24, %v2639_v51  ;;  %1432 = vperm.xlu1 (!%p2132_p3), %2357, %v1380_v28   ;;  %v2918_v29 = vrot.slane (!%p2132_p3), %v1380_v28, %v2639_v51  ;;  %2360 = vlog2.f32 (!%p2132_p3), %v1339_v18  ;;  %v1343_v33 = vld [vmem:[#allocation3 + $0x20] sm:$0xff] (!%p2132_p3)  ;;  %v1348_v31 = vld [vmem:[#allocation5] sm:$0xff] (!%p2132_p3)  ;;  %v1351_v61 = vld [vmem:[#allocation5 + $0x18] sm:$0xff] (!%p2132_p3) }
 0x4ac   : > { %2362 = vlog2.f32 (!%p2132_p3), %v1342_v27  ;;  %vm3241_vm5 = vcmask (!%p2132_p3), 7168   ;;  %v1349_v21 = vld [vmem:[#allocation5 + $0x8] sm:$0xff] (!%p2132_p3)  ;;  %v1350_v36 = vld [vmem:[#allocation5 + $0x10] sm:$0xff] (!%p2132_p3)  ;;  %v1352_v44 = vld [vmem:[#allocation5 + $0x20] sm:$0xff] (!%p2132_p3) }
 0x4ad   : > { %vm1393_vm7 = vcmp.eq.s32.totalorder (!%p2132_p3), %v2912_v30, 1  ;;  %vm1394_vm2 = vcmp.eq.s32.totalorder (!%p2132_p3), %v2915_v32, 1  ;;  %vm1395_vm8 = vcmp.eq.s32.totalorder (!%p2132_p3), %v2918_v29, 1  ;;  %2364 = vlog2.f32 (!%p2132_p3), %v1341_v26  ;;  %vm3242_vm12 = vmmov (!%p2132_p3), %vm3241_vm5  ;;  %v1353_v7 = vld [vmem:[#allocation5 + $0x28] sm:$0xff] (!%p2132_p3)  ;;  %v1346_v28 = vld [vmem:[#allocation4 + $0x1] sm:$0x1] (!%p2132_p3) }
 0x4ae   : > { %v1453_v34 = vsel (!%p2132_p3), %vm1393_vm7, 1.0, %v1339_v18  ;;  %v1454_v13 = vsel (!%p2132_p3), %vm1393_vm7, 1.0, %v1340_v12  ;;  %v1455_v35 = vsel (!%p2132_p3), %vm1394_vm2, 1.0, %v1341_v26  ;;  %v1456_v39 = vsel (!%p2132_p3), %vm1394_vm2, 1.0, %v1342_v27  ;;  %vm3243_vm0 = vmmov (!%p2132_p3), %vm3241_vm5  ;;  %v1345_v26 = vld [vmem:[#allocation4] sm:$0x1] (!%p2132_p3) }
 0x4af   : > { %1459 = vst.msk [vmem:[#allocation3] sm:$0xff] (!%p2132_p3), %vm3241_vm5, %v1453_v34  ;;  %1425 = vperm.xlu0 (!%p2132_p3), %2356, %v1379_v24   ;;  %vm3244_vm9 = vmmov (!%p2132_p3), %vm3243_vm0  ;;  %v1457_v19 = vsel (!%p2132_p3), %vm1395_vm8, 1.0, %v1343_v33  ;;  %v1458_v23 = vsel (!%p2132_p3), %vm1395_vm8, 1.0, %v1344_v8  ;;  %2366 = vlog2.f32 (!%p2132_p3), %v1344_v8  ;;  %v1347_v27 = vld [vmem:[#allocation4 + $0x2] sm:$0x1] (!%p2132_p3) }
 0x4b0   : > { %1460 = vst.msk [vmem:[#allocation3 + $0x8] sm:$0xff] (!%p2132_p3), %vm3242_vm12, %v1454_v13  ;;  %vm3245_vm10 = vmmov (!%p2132_p3), %vm3243_vm0  ;;  %2368 = vlog2.f32 (!%p2132_p3), %v1343_v33 }
 0x4b1   : > { %1461 = vst.msk [vmem:[#allocation3 + $0x10] sm:$0xff] %vm3243_vm0, %v1455_v35  ;;  %vm3246_vm11 = vmmov %vm3243_vm0  ;;  %2370 = vlog2.f32 %v1345_v26 }
 0x4b2   : > { %1462 = vst.msk [vmem:[#allocation3 + $0x18] sm:$0xff] %vm3244_vm9, %v1456_v39  ;;  %vm3247_vm13 = vmmov %vm3243_vm0  ;;  %2372 = vlog2.f32 %v1347_v27 }
 0x4b3   : > { %1463 = vst.msk [vmem:[#allocation3 + $0x20] sm:$0xff] %vm3245_vm10, %v1457_v19  ;;  %vm3248_vm14 = vmmov %vm3243_vm0  ;;  %2374 = vlog2.f32 %v1346_v28 }
 0x4b4   : > { %1464 = vst.msk [vmem:[#allocation3 + $0x28] sm:$0xff] %vm3246_vm11, %v1458_v23  ;;  %v2359_v48 = vpop.eup %2358  ;;  %vm3249_vm3 = vmmov %vm3243_vm0 }
 0x4b5   : > { %v2361_v53 = vpop.eup %2360  ;;  %v1357_v57 = vmul.f32 0.6931472, %v2359_v48  ;;  %vm3250_vm15 = vmmov %vm3243_vm0  ;;  %v1402_v48 = vld [vmem:[#allocation6] sm:$0x1] }
 0x4b6   : > { %v2363_v58 = vpop.eup %2362  ;;  %v1355_v25 = vmul.f32 0.6931472, %v2361_v53  ;;  %vm3251_vm4 = vmmov %vm3243_vm0 }
 0x4b7   : > { %v2365_v41 = vpop.eup %2364  ;;  %v1367_v11 = vmul.f32 0.5, %v1357_v57  ;;  %v1361_v59 = vmul.f32 0.6931472, %v2363_v58  ;;  %vm3252_vm6 = vmmov %vm3243_vm0 }
 0x4b8   : > { %v1366_v60 = vmul.f32 0.5, %v1355_v25  ;;  %v1359_v62 = vmul.f32 0.6931472, %v2365_v41 }
 0x4b9   : > { %v2367_v20 = vpop.eup %2366  ;;  %v1373_v63 = vsub.f32 %v1349_v21, %v1367_v11  ;;  %v1369_v22 = vmul.f32 0.5, %v1361_v59 }
 0x4ba   : > { %v2369_v1 = vpop.eup %2368  ;;  %v1372_v2 = vsub.f32 %v1348_v31, %v1366_v60  ;;  %v1368_v3 = vmul.f32 0.5, %v1359_v62  ;;  %v1365_v4 = vmul.f32 0.6931472, %v2367_v20 }
 0x4bb   : > { %v1397_v5 = vsel %vm1393_vm7, %v1373_v63, %v1349_v21  ;;  %v1375_v6 = vsub.f32 %v1351_v61, %v1369_v22  ;;  %v1363_v10 = vmul.f32 0.6931472, %v2369_v1  ;;  %v2371_v8 = vpop.eup %2370 }
 0x4bc   : > { %1478 = vperm.xlu0 %2356, %v1397_v5   ;;  %1445 = vst.msk [vmem:[#allocation5 + $0x8] sm:$0xff] %vm3247_vm13, %v1397_v5  ;;  %v1396_v16 = vsel %vm1393_vm7, %v1372_v2, %v1348_v31  ;;  %v1374_v17 = vsub.f32 %v1350_v36, %v1368_v3  ;;  %v1371_v47 = vmul.f32 0.5, %v1365_v4  ;;  %v2373_v33 = vpop.eup %2372  ;;  %v1406_v13 = vmul.f32 0.6931472, %v2371_v8 }
 0x4bd   : > { %1473 = vperm.xlu1 %2357, %v1396_v16   ;;  %1444 = vst.msk [vmem:[#allocation5] sm:$0xff] %vm3248_vm14, %v1396_v16  ;;  %v1399_v50 = vsel %vm1394_vm2, %v1375_v6, %v1351_v61  ;;  %v1370_v45 = vmul.f32 0.5, %v1363_v10  ;;  %v2375_v34 = vpop.eup %2374  ;;  %v1410_v35 = vmul.f32 0.6931472, %v2373_v33  ;;  %vm3265_vm14 = vcmask 130048  }
 0x4be   : > { %1447 = vst.msk [vmem:[#allocation5 + $0x18] sm:$0xff] %vm3249_vm3, %v1399_v50  ;;  %v1398_v18 = vsel %vm1394_vm2, %v1374_v17, %v1350_v36  ;;  %v1377_v12 = vsub.f32 %v1353_v7, %v1371_v47  ;;  %v1408_v39 = vmul.f32 0.6931472, %v2375_v34  ;;  %v1411_v19 = vmul.f32 0.5, %v1406_v13  ;;  %vm3266_vm3 = vmmov %vm3265_vm14 }
 0x4bf   : > { %1446 = vst.msk [vmem:[#allocation5 + $0x10] sm:$0xff] %vm3250_vm15, %v1398_v18  ;;  %v1376_v56 = vsub.f32 %v1352_v44, %v1370_v45  ;;  %v1413_v23 = vmul.f32 0.5, %v1410_v35  ;;  %vm3267_vm15 = vmmov %vm3266_vm3 }
 0x4c0   : > { %1488 = vperm.xlu0 %2356, %v1399_v50   ;;  %v1401_v0 = vsel %vm1395_vm8, %v1377_v12, %v1353_v7  ;;  %v1412_v53 = vmul.f32 0.5, %v1408_v39  ;;  %v1414_v57 = vsub.f32 %v1402_v48, %v1411_v19 }
 0x4c1   : > { %1483 = vperm.xlu1 %2357, %v1398_v18   ;;  %1449 = vst.msk [vmem:[#allocation5 + $0x28] sm:$0xff] %vm3251_vm4, %v1401_v0  ;;  %v1400_v24 = vsel %vm1395_vm8, %v1376_v56, %v1352_v44  ;;  %vm3257_vm8 = vcmask 122880   ;;  %vm3268_vm4 = vmmov %vm3266_vm3 }
 0x4c2   : > { %1448 = vst.msk [vmem:[#allocation5 + $0x20] sm:$0xff] %vm3252_vm6, %v1400_v24  ;;  %vm3258_vm5 = vmmov %vm3257_vm8 }
 0x4c3   : > { %vm3259_vm12 = vmmov %vm3258_vm5 }
 0x4c4   : > { %1498 = vperm.xlu0 %2356, %v1401_v0   ;;  %vm3260_vm0 = vmmov %vm3258_vm5 }
 0x4c5   : > { %1493 = vperm.xlu1 %2357, %v1400_v24   ;;  %vm3263_vm10 = vmmov %vm3260_vm0 }
 0x4c6   : > { %vm3264_vm11 = vmmov %vm3260_vm0 }
 0x4c8   : > { %1565 = vperm.xlu0 %2356, %v2915_v32   ;;  %v1404_v32 = vld [vmem:[#allocation6 + $0x2] sm:$0x1] }
 0x4c9   : > { %1562 = vperm.xlu1 %2357, %v2912_v30   ;;  %v1416_v21 = vsub.f32 %v1404_v32, %v1413_v23 }
 0x4cd   : > { %1568 = vperm.xlu1 %2357, %v2918_v29   ;;  %v1403_v29 = vld [vmem:[#allocation6 + $0x1] sm:$0x1] }
 0x4ce   : > { %v1415_v31 = vsub.f32 %v1403_v29, %v1412_v53 }
 0x52a   : > { %v1419_v30 = vpop.permute.xlu0 %1418  ;;  %v1433_v58 = vpop.permute.xlu1 %1432 }
 0x52b   : > { %v1423_v25 = vrot.slane %v1419_v30, %v2639_v51  ;;  %v1437_v41 = vrot.slane %v1433_v58, %v2639_v51 }
 0x52d   : > { %vm2964_vm7 = vcmp.eq.s32.totalorder %v1423_v25, 1  ;;  %vm2968_vm2 = vcmp.eq.s32.totalorder %v1437_v41, 1 }
 0x52e   : > { %v1441_v60 = vsel %vm2964_vm7, %v1414_v57, %v1402_v48  ;;  %v1465_v61 = vsel %vm2964_vm7, 1.0, %v1345_v26  ;;  %v1426_v62 = vpop.permute.xlu0 %1425  ;;  %v1443_v20 = vsel %vm2968_vm2, %v1416_v21, %v1404_v32  ;;  %v1467_v63 = vsel %vm2968_vm2, 1.0, %v1347_v27 }
 0x52f   : > { %1450 = vst.msk [vmem:[#allocation6] sm:$0x1] %vm3257_vm8, %v1441_v60  ;;  %v1430_v22 = vrot.slane %v1426_v62, %v2639_v51  ;;  %v1513_v4 = vrot.slane %v1441_v60, %v2639_v51  ;;  %vm3269_vm8 = vmmov %vm3266_vm3 }
 0x530   : > { %1468 = vst.msk [vmem:[#allocation4] sm:$0x1] %vm3258_vm5, %v1465_v61  ;;  %vm3270_vm5 = vmmov %vm3266_vm3 }
 0x531   : > { %1452 = vst.msk [vmem:[#allocation6 + $0x2] sm:$0x1] %vm3259_vm12, %v1443_v20  ;;  %vm2985_vm9 = vcmp.eq.s32.totalorder %v1430_v22, 1  ;;  %vm3271_vm12 = vmmov %vm3266_vm3 }
 0x532   : > { %1470 = vst.msk [vmem:[#allocation4 + $0x2] sm:$0x1] %vm3260_vm0, %v1467_v63  ;;  %v1442_v1 = vsel %vm2985_vm9, %v1415_v31, %v1403_v29  ;;  %v1466_v2 = vsel %vm2985_vm9, 1.0, %v1346_v28  ;;  %v1521_v28 = vrot.slane %v1443_v20, %v2639_v51  ;;  %vm3272_vm0 = vmmov %vm3266_vm3 }
 0x533   : > { %1451 = vst.msk [vmem:[#allocation6 + $0x1] sm:$0x1] %vm3263_vm10, %v1442_v1  ;;  %v1517_v47 = vrot.slane %v1442_v1, %v2639_v51 }
 0x534   : > { %1469 = vst.msk [vmem:[#allocation4 + $0x1] sm:$0x1] %vm3264_vm11, %v1466_v2  ;;  %vm3273_vm11 = vmmov %vm3272_vm0 }
 0x53b   : > { %v1479_v3 = vpop.permute.xlu0 %1478 }
 0x53c   : > { %v1502_v5 = vadd.f32 %v1479_v3, %v2644_v9  ;;  %v1474_v6 = vpop.permute.xlu1 %1473 }
 0x53d   : > { %v1501_v7 = vadd.f32 %v1474_v6, %v2646_v14 }
 0x53e   : > { %v1526_v10 = vadd.f32 %v1513_v4, %v1502_v5 }
 0x53f   : > { %v1525_v16 = vadd.f32 %v1513_v4, %v1501_v7  ;;  %v1489_v17 = vpop.permute.xlu0 %1488 }
 0x540   : > { %v1532_v44 = vsub.f32 0.0, %v1526_v10  ;;  %v1504_v50 = vadd.f32 %v1489_v17, %v2650_v38  ;;  %v1484_v45 = vpop.permute.xlu1 %1483 }
 0x541   : > { %v1531_v18 = vsub.f32 0.0, %v1525_v16  ;;  %v1503_v12 = vadd.f32 %v1484_v45, %v2652_v42 }
 0x542   : > { %v1538_v56 = vmul.f32 2.0, %v1532_v44  ;;  %v1528_v0 = vadd.f32 %v1517_v47, %v1504_v50 }
 0x543   : > { %v1537_v24 = vmul.f32 2.0, %v1531_v18  ;;  %v1527_v26 = vadd.f32 %v1517_v47, %v1503_v12  ;;  %v1499_v27 = vpop.permute.xlu0 %1498 }
 0x544   : > { %v2134_v8 = vadd.f32 -10.124097, %v1538_v56  ;;  %v1534_v33 = vsub.f32 0.0, %v1528_v0  ;;  %v1506_v34 = vadd.f32 %v1499_v27, %v2654_v43  ;;  %v1494_v13 = vpop.permute.xlu1 %1493 }
 0x545   : > { %v2133_v35 = vadd.f32 -10.124097, %v1537_v24  ;;  %v1533_v39 = vsub.f32 0.0, %v1527_v26  ;;  %v1505_v19 = vadd.f32 %v1494_v13, %v2657_v46 }
 0x546   : > { %v1551_v23 = vmul.f32 1.442695, %v2134_v8  ;;  %v1540_v48 = vmul.f32 2.0, %v1534_v33  ;;  %v1530_v32 = vadd.f32 %v1521_v28, %v1506_v34 }
 0x547   : > { %v1549_v53 = vmul.f32 1.442695, %v2133_v35  ;;  %v1539_v30 = vmul.f32 2.0, %v1533_v39  ;;  %v1529_v57 = vadd.f32 %v1521_v28, %v1505_v19  ;;  %v1566_v4 = vpop.permute.xlu0 %1565 }
 0x548   : > { %2376 = vpow2.f32 %v1551_v23  ;;  %v2136_v29 = vadd.f32 -10.124097, %v1540_v48  ;;  %v1536_v58 = vsub.f32 0.0, %v1530_v32  ;;  %v1563_v1 = vpop.permute.xlu1 %1562  ;;  %vm1571_vm6 = vcmp.eq.s32.totalorder %v1566_v4, 1  ;;  %v1612_v23 = vld [vmem:[#allocation7] sm:$0x1] }
 0x549   : > { %2378 = vpow2.f32 %v1549_v53  ;;  %v2135_v21 = vadd.f32 -10.124097, %v1539_v30  ;;  %v1535_v25 = vsub.f32 0.0, %v1529_v57  ;;  %vm1570_vm13 = vcmp.eq.s32.totalorder %v1563_v1, 1  ;;  %v1613_v57 = vld [vmem:[#allocation7 + $0x1] sm:$0x1] }
 0x54a   : > { %v1555_v41 = vmul.f32 1.442695, %v2136_v29  ;;  %v1542_v31 = vmul.f32 2.0, %v1536_v58 }
 0x54b   : > { %v1553_v60 = vmul.f32 1.442695, %v2135_v21  ;;  %v1541_v61 = vmul.f32 2.0, %v1535_v25 }
 0x54c   : > { %2380 = vpow2.f32 %v1555_v41  ;;  %v2138_v62 = vadd.f32 -10.124097, %v1542_v31  ;;  %v1569_v50 = vpop.permute.xlu1 %1568  ;;  %v1614_v41 = vld [vmem:[#allocation7 + $0x2] sm:$0x1] }
 0x54d   : > { %2382 = vpow2.f32 %v1553_v60  ;;  %v2137_v20 = vadd.f32 -10.124097, %v1541_v61  ;;  %vm1572_vm10 = vcmp.eq.s32.totalorder %v1569_v50, 1 }
 0x54e   : > { %v1559_v63 = vmul.f32 1.442695, %v2138_v62 }
 0x54f   : > { %v1557_v22 = vmul.f32 1.442695, %v2137_v20 }
 0x550   : > { %2384 = vpow2.f32 %v1559_v63 }
 0x551   : > { %2386 = vpow2.f32 %v1557_v22 }
 0x552   : > { %v2377_v2 = vpop.eup %2376 }
 0x553   : > { %v2379_v3 = vpop.eup %2378  ;;  %v1574_v5 = vsel %vm1570_vm13, %v2377_v2, %v2700_v55 }
 0x554   : > { %v1573_v6 = vsel %vm1570_vm13, %v2379_v3, %v2698_v54  ;;  %1580 = vst.msk [vmem:[#allocation2 + $0x8] sm:$0xff] %vm3265_vm14, %v1574_v5  ;;  %v1586_v7 = vsel %vm3266_vm3, %v1574_v5, 0.0  ;;  %vm3274_vm13 = vmmov %vm3272_vm0 }
 0x555   : > { %1579 = vst.msk [vmem:[#allocation2] sm:$0xff] %vm3267_vm15, %v1573_v6  ;;  %v1585_v10 = vsel %vm3268_vm4, %v1573_v6, 0.0  ;;  %vm3275_vm14 = vmmov %vm3272_vm0  ;;  %vm3277_vm15 = vcmask 122880  }
 0x556   : > { %v2381_v16 = vpop.eup %2380  ;;  %v1587_v17 = vadd.f32 %v1586_v7, %v1585_v10  ;;  %vm3276_vm3 = vmmov %vm3272_vm0 }
 0x557   : > { %v2383_v47 = vpop.eup %2382  ;;  %v1576_v44 = vsel %vm1571_vm6, %v2381_v16, %v2694_v52  ;;  %vm3278_vm4 = vmmov %vm3277_vm15 }
 0x558   : > { %v1575_v45 = vsel %vm1571_vm6, %v2383_v47, %v2690_v49  ;;  %1582 = vst.msk [vmem:[#allocation2 + $0x18] sm:$0xff] %vm3269_vm8, %v1576_v44  ;;  %v1595_v54 = vsel %vm3270_vm5, %v1576_v44, 0.0  ;;  %v1588_v55 = vrot.slane %v1587_v17, 4  ;;  %vm3279_vm6 = vmmov %vm3278_vm4 }
 0x559   : > { %1581 = vst.msk [vmem:[#allocation2 + $0x10] sm:$0xff] %vm3271_vm12, %v1575_v45  ;;  %v1594_v18 = vsel %vm3272_vm0, %v1575_v45, 0.0 }
 0x55a   : > { %v2385_v12 = vpop.eup %2384  ;;  %v1596_v56 = vadd.f32 %v1595_v54, %v1594_v18  ;;  %v1589_v0 = vadd.f32 %v1588_v55, %v1587_v17 }
 0x55b   : > { %v2387_v24 = vpop.eup %2386  ;;  %v1578_v26 = vsel %vm1572_vm10, %v2385_v12, %v2682_v37 }
 0x55c   : > { %v1597_v52 = vrot.slane %v1596_v56, 4  ;;  %v1590_v27 = vrot.slane %v1589_v0, 2  ;;  %v1577_v49 = vsel %vm1572_vm10, %v2387_v24, %v2684_v40  ;;  %1584 = vst.msk [vmem:[#allocation2 + $0x28] sm:$0xff] %vm3273_vm11, %v1578_v26  ;;  %v1604_v28 = vsel %vm3274_vm13, %v1578_v26, 0.0 }
 0x55d   : > { %1583 = vst.msk [vmem:[#allocation2 + $0x20] sm:$0xff] %vm3275_vm14, %v1577_v49  ;;  %v1603_v8 = vsel %vm3276_vm3, %v1577_v49, 0.0 }
 0x55e   : > { %v1598_v33 = vadd.f32 %v1597_v52, %v1596_v56  ;;  %v1591_v34 = vadd.f32 %v1590_v27, %v1589_v0  ;;  %v1605_v13 = vadd.f32 %v1604_v28, %v1603_v8 }
 0x560   : > { %v1599_v35 = vrot.slane %v1598_v33, 2  ;;  %v1592_v39 = vrot.slane %v1591_v34, 1  ;;  %v1606_v19 = vrot.slane %v1605_v13, 4 }
 0x562   : > { %v1600_v37 = vadd.f32 %v1599_v35, %v1598_v33  ;;  %v1593_v48 = vadd.f32 %v1592_v39, %v1591_v34  ;;  %v1607_v32 = vadd.f32 %v1606_v19, %v1605_v13 }
 0x564   : > { %v1601_v53 = vrot.slane %v1600_v37, 1  ;;  %v1615_v40 = vsel %vm2964_vm7, %v1593_v48, %v1612_v23  ;;  %v1608_v30 = vrot.slane %v1607_v32, 2 }
 0x565   : > { %1618 = vst.msk [vmem:[#allocation7] sm:$0x1] %vm3277_vm15, %v1615_v40 }
 0x566   : > { %v1602_v29 = vadd.f32 %v1601_v53, %v1600_v37  ;;  %v1609_v58 = vadd.f32 %v1608_v30, %v1607_v32 }
 0x568   : > { %v1616_v21 = vsel %vm2985_vm9, %v1602_v29, %v1613_v57  ;;  %v1610_v25 = vrot.slane %v1609_v58, 1 }
 0x569   : > { %1619 = vst.msk [vmem:[#allocation7 + $0x1] sm:$0x1] %vm3278_vm4, %v1616_v21 }
 0x56a   : > { %v1611_v31 = vadd.f32 %v1610_v25, %v1609_v58 }
 0x56c   : > { %v1617_v60 = vsel %vm2968_vm2, %v1611_v31, %v1614_v41 }
 0x56d   : > { %1620 = vst.msk [vmem:[#allocation7 + $0x2] sm:$0x1] %vm3279_vm6, %v1617_v60 }
 0x56e PF: > { %s721_s13 = sadd.s32 1, %s2468_s13  }
 0x56f   : > { %p718_p4 = scmp.ge.s32.totalorder %s721_s13, 50  }
 0x570   :  { %vm3280_vm7 = vcmask (%p718_p4), 130048   ;;  %v1673_v11 = vld [vmem:[#allocation4 + $0x1] sm:$0x1] (%p718_p4)  ;;  %2389 = vset.pattern.permute.xlu1 (%p718_p4), %v2474_v15  ;;  %2388 = vset.pattern.permute.xlu0 (%p718_p4), %v2474_v15  ;;  %v1674_v59 = vld [vmem:[#allocation4 + $0x2] sm:$0x1] (%p718_p4)  ;;  %v1634_v21 = vld [vmem:[#allocation5 + $0x8] sm:$0xff] (%p718_p4) }
 0x571   :  { %720 = sbr.rel (!%p718_p4) target bundleno = 287 (0x11f), region = 49  ;;  %1623 = vst.msk [vmem:[#allocation2 + $0x10] sm:$0xff] (%p718_p4), %vm3280_vm7, %v2652_v42  ;;  %vm3281_vm9 = vmmov (%p718_p4), %vm3280_vm7  ;;  %2390 = vlog2.f32 (%p718_p4), %v1673_v11  ;;  %v1672_v42 = vld [vmem:[#allocation4] sm:$0x1] (%p718_p4)  ;;  %v1671_v1 = vld [vmem:[#allocation6 + $0x2] sm:$0x1] (%p718_p4) }
 0x572   :  { %1621 = vst.msk [vmem:[#allocation2] sm:$0xff] (%p718_p4), %vm3281_vm9, %v2646_v14  ;;  %vm3282_vm8 = vmmov (%p718_p4), %vm3280_vm7  ;;  %2392 = vlog2.f32 (%p718_p4), %v1672_v42  ;;  %v1635_v60 = vld [vmem:[#allocation5 + $0x10] sm:$0xff] (%p718_p4) }
 0x573   :  { %1624 = vst.msk [vmem:[#allocation2 + $0x18] sm:$0xff] (%p718_p4), %vm3282_vm8, %v2650_v38  ;;  %vm3283_vm2 = vmmov (%p718_p4), %vm3280_vm7  ;;  %2394 = vlog2.f32 (%p718_p4), %v1674_v59  ;;  %v1639_v32 = vld [vmem:[#allocation3] sm:$0xff] (%p718_p4) }
 0x574   :  { %1622 = vst.msk [vmem:[#allocation2 + $0x8] sm:$0xff] (%p718_p4), %vm3283_vm2, %v2644_v9  ;;  %vm3284_vm5 = vmmov (%p718_p4), %vm3283_vm2  ;;  %v1670_v9 = vld [vmem:[#allocation6 + $0x1] sm:$0x1] (%p718_p4)  ;;  %v1640_v56 = vld [vmem:[#allocation3 + $0x8] sm:$0xff] (%p718_p4) }
 0x575   :  { %1625 = vst.msk [vmem:[#allocation2 + $0x20] sm:$0xff] (%p718_p4), %vm3284_vm5, %v2657_v46  ;;  %vm3285_vm12 = vmmov (%p718_p4), %vm3283_vm2  ;;  %v1669_v46 = vld [vmem:[#allocation6] sm:$0x1] (%p718_p4)  ;;  %2396 = vlog2.f32 (%p718_p4), %v1640_v56  ;;  %v1641_v33 = vld [vmem:[#allocation3 + $0x10] sm:$0xff] (%p718_p4) }
 0x576   :  { %1626 = vst.msk [vmem:[#allocation2 + $0x28] sm:$0xff] (%p718_p4), %vm3285_vm12, %v2654_v43  ;;  %vm3286_vm0 = vmmov (%p718_p4), %vm3283_vm2  ;;  %2398 = vlog2.f32 (%p718_p4), %v1641_v33 }
 0x577   :  { %vm3287_vm10 = vmmov (%p718_p4), %vm3286_vm0  ;;  %2400 = vlog2.f32 (%p718_p4), %v1639_v32 }
 0x578   :  { %v3048_v3 = vld [vmem:[#allocation2 + $0x10] sm:$0xff]  ;;  %vm3288_vm11 = vmmov %vm3286_vm0 }
 0x579   :  { %v3053_v6 = vld [vmem:[#allocation2] sm:$0xff]  ;;  %vm3289_vm13 = vmmov %vm3286_vm0 }
 0x57a   :  { %v3050_v4 = vld [vmem:[#allocation2 + $0x18] sm:$0xff]  ;;  %vm3290_vm14 = vmmov %vm3286_vm0 }
 0x57b   :  { %v2391_v14 = vpop.eup %2390  ;;  %v3055_v7 = vld [vmem:[#allocation2 + $0x8] sm:$0xff]  ;;  %vm3291_vm3 = vmmov %vm3286_vm0 }
 0x57c   :  { %v2393_v38 = vpop.eup %2392  ;;  %v1678_v36 = vmul.f32 0.6931472, %v2391_v14  ;;  %v3058_v17 = vld [vmem:[#allocation2 + $0x20] sm:$0xff]  ;;  %vm3292_vm15 = vmmov %vm3286_vm0 }
 0x57d   :  { %v2395_v61 = vpop.eup %2394  ;;  %v1676_v62 = vmul.f32 0.6931472, %v2393_v38  ;;  %v1633_v14 = vld [vmem:[#allocation5] sm:$0xff]  ;;  %vm3293_vm4 = vmmov %vm3286_vm0 }
 0x57e   :  { %v1682_v20 = vmul.f32 0.5, %v1678_v36  ;;  %v1680_v63 = vmul.f32 0.6931472, %v2395_v61  ;;  %v3086_v36 = vld [vmem:[#allocation2 + $0x28] sm:$0xff]  ;;  %vm3294_vm6 = vmmov %vm3286_vm0 }
 0x57f   :  { %v1681_v22 = vmul.f32 0.5, %v1676_v62  ;;  %v2397_v53 = vpop.eup %2396  ;;  %vm3295_vm7 = vmmov %vm3286_vm0 }
 0x580   :  { %v1685_v15 = vsub.f32 %v1670_v9, %v1682_v20  ;;  %v1683_v2 = vmul.f32 0.5, %v1680_v63  ;;  %v1648_v30 = vmul.f32 0.6931472, %v2397_v53  ;;  %v2399_v57 = vpop.eup %2398  ;;  %v1642_v20 = vld [vmem:[#allocation3 + $0x18] sm:$0xff]  ;;  %v1643_v63 = vld [vmem:[#allocation3 + $0x20] sm:$0xff]  ;;  %vm3296_vm9 = vmmov %vm3286_vm0 }
 0x581   :  { %v1684_v43 = vsub.f32 %v1669_v46, %v1681_v22  ;;  %v1650_v58 = vmul.f32 0.6931472, %v2399_v57  ;;  %v2401_v25 = vpop.eup %2400  ;;  %2402 = vlog2.f32 %v1642_v20  ;;  %vm3297_vm8 = vmmov %vm3286_vm0 }
 0x582   :  { %v1697_v5 = vrot.slane %v1685_v15, %v2639_v51  ;;  %v1686_v10 = vsub.f32 %v1671_v1, %v1683_v2  ;;  %v1658_v29 = vmul.f32 0.5, %v1648_v30  ;;  %v1646_v11 = vmul.f32 0.6931472, %v2401_v25  ;;  %v1644_v1 = vld [vmem:[#allocation3 + $0x28] sm:$0xff]  ;;  %vm3298_vm2 = vmmov %vm3286_vm0 }
 0x583   :  { %v1693_v16 = vrot.slane %v1684_v43, %v2639_v51  ;;  %v1659_v31 = vmul.f32 0.5, %v1650_v58  ;;  %2404 = vlog2.f32 %v1643_v63  ;;  %vm3299_vm5 = vmmov %vm3286_vm0 }
 0x584   :  { %v1707_v47 = vadd.f32 %v1697_v5, %v3048_v3  ;;  %v1708_v44 = vadd.f32 %v1697_v5, %v3050_v4  ;;  %v1701_v50 = vrot.slane %v1686_v10, %v2639_v51  ;;  %v1664_v41 = vsub.f32 %v1634_v21, %v1658_v29  ;;  %vm3300_vm12 = vmmov %vm3286_vm0 }
 0x585   :  { %v1705_v45 = vadd.f32 %v1693_v16, %v3053_v6  ;;  %v1706_v54 = vadd.f32 %v1693_v16, %v3055_v7  ;;  %v1665_v42 = vsub.f32 %v1635_v60, %v1659_v31  ;;  %v1657_v59 = vmul.f32 0.5, %v1646_v11 }
 0x586   :  { %v1713_v55 = vsub.f32 0.0, %v1707_v47  ;;  %v1714_v18 = vsub.f32 0.0, %v1708_v44  ;;  %v1709_v12 = vadd.f32 %v1701_v50, %v3058_v17  ;;  %v1710_v61 = vadd.f32 %v1701_v50, %v3086_v36  ;;  %v1636_v47 = vld [vmem:[#allocation5 + $0x18] sm:$0xff] }
 0x587   :  { %v1711_v0 = vsub.f32 0.0, %v1705_v45  ;;  %v1712_v24 = vsub.f32 0.0, %v1706_v54  ;;  %v1663_v38 = vsub.f32 %v1633_v14, %v1657_v59  ;;  %2406 = vlog2.f32 %v1644_v1  ;;  %v1637_v54 = vld [vmem:[#allocation5 + $0x20] sm:$0xff] }
 0x588   :  { %v1719_v26 = vmul.f32 2.0, %v1713_v55  ;;  %v1720_v52 = vmul.f32 2.0, %v1714_v18  ;;  %v1715_v27 = vsub.f32 0.0, %v1709_v12  ;;  %v1716_v9 = vsub.f32 0.0, %v1710_v61  ;;  %v1638_v12 = vld [vmem:[#allocation5 + $0x28] sm:$0xff] }
 0x589   :  { %v1717_v49 = vmul.f32 2.0, %v1711_v0  ;;  %v1718_v28 = vmul.f32 2.0, %v1712_v24 }
 0x58a   :  { %v3066_v8 = vadd.f32 -2.7725887, %v1719_v26  ;;  %v3068_v51 = vadd.f32 -2.7725887, %v1720_v52  ;;  %v1721_v35 = vmul.f32 2.0, %v1715_v27  ;;  %v1722_v62 = vmul.f32 2.0, %v1716_v9 }
 0x58b   :  { %v3070_v34 = vadd.f32 -2.7725887, %v1717_v49  ;;  %v3072_v13 = vadd.f32 -2.7725887, %v1718_v28  ;;  %v2403_v15 = vpop.eup %2402 }
 0x58c   :  { %v1735_v39 = vsel %vm3286_vm0, %v3066_v8, -inf  ;;  %v1738_v23 = vsel %vm3288_vm11, %v3068_v51, -inf  ;;  %v3082_v48 = vadd.f32 -2.7725887, %v1721_v35  ;;  %v3089_v46 = vadd.f32 -2.7725887, %v1722_v62  ;;  %vm3302_vm11 = vmmov %vm3286_vm0 }
 0x58d   :  { %1736 = vmax.xlane.f32.xlu1 %v1735_v39  ;;  %v1729_v19 = vsel %vm3287_vm10, %v3070_v34, -inf  ;;  %v1732_v37 = vsel %vm3289_vm13, %v3072_v13, -inf  ;;  %v1652_v2 = vmul.f32 0.6931472, %v2403_v15  ;;  %v2405_v43 = vpop.eup %2404  ;;  %vm3301_vm10 = vmmov %vm3286_vm0 }
 0x58e   :  { %1730 = vmax.xlane.f32.xlu0 %v1729_v19  ;;  %v1741_v40 = vsel %vm3290_vm14, %v3082_v48, -inf  ;;  %v1744_v22 = vsel %vm3291_vm3, %v3089_v46, -inf  ;;  %v1654_v10 = vmul.f32 0.6931472, %v2405_v43  ;;  %vm3303_vm13 = vmmov %vm3286_vm0 }
 0x58f   :  { %v1660_v5 = vmul.f32 0.5, %v1652_v2  ;;  %vm3304_vm14 = vmmov %vm3286_vm0 }
 0x590   :  { %v1661_v50 = vmul.f32 0.5, %v1654_v10  ;;  %vm3305_vm3 = vmmov %vm3286_vm0 }
 0x591   :  { %1739 = vmax.xlane.f32.xlu1 %v1738_v23  ;;  %v2407_v16 = vpop.eup %2406  ;;  %v1666_v44 = vsub.f32 %v1636_v47, %v1660_v5 }
 0x592   :  { %1733 = vmax.xlane.f32.xlu0 %v1732_v37  ;;  %v1656_v45 = vmul.f32 0.6931472, %v2407_v16  ;;  %v1667_v55 = vsub.f32 %v1637_v54, %v1661_v50 }
 0x594   :  { %v1662_v18 = vmul.f32 0.5, %v1656_v45 }
 0x596   :  { %1742 = vmax.xlane.f32.xlu0 %v1741_v40  ;;  %v1668_v56 = vsub.f32 %v1638_v12, %v1662_v18 }
 0x5a2   :  { %1820 = vperm.xlu1 %2389, %v1664_v41  }
 0x5a6   :  { %1825 = vperm.xlu1 %2389, %v1665_v42  }
 0x5ac   :  { %1815 = vperm.xlu0 %2388, %v1663_v38  }
 0x5ca   :  { %1745 = vmax.xlane.f32.xlu1 %v1744_v22 }
 0x5db   :  { %1830 = vperm.xlu1 %2389, %v1666_v44  }
 0x5df   :  { %1835 = vperm.xlu1 %2389, %v1667_v55  }
 0x5e3   :  { %1840 = vperm.xlu1 %2389, %v1668_v56  }
 0x61a   :  { %v3093_v0 = vpop.xlane.xlu1 %1736 }
 0x61b   :  { %v1749_v24 = vsub.f32 %v3066_v8, %v3093_v0  ;;  %v3097_v26 = vpop.xlane.xlu0 %1730 }
 0x61c   :  { %v1747_v52 = vsub.f32 %v3070_v34, %v3097_v26 }
 0x61d   :  { %v1757_v27 = vmul.f32 1.442695, %v1749_v24 }
 0x61e   :  { %v1753_v49 = vmul.f32 1.442695, %v1747_v52  ;;  %v3101_v28 = vpop.xlane.xlu1 %1739 }
 0x61f   :  { %v1750_v33 = vsub.f32 %v3068_v51, %v3101_v28  ;;  %v3105_v35 = vpop.xlane.xlu0 %1733 }
 0x620   :  { %2408 = vpow2.f32 %v1753_v49  ;;  %v1748_v39 = vsub.f32 %v3072_v13, %v3105_v35 }
 0x621   :  { %2410 = vpow2.f32 %v1757_v27  ;;  %v1759_v8 = vmul.f32 1.442695, %v1750_v33 }
 0x622   :  { %v1755_v19 = vmul.f32 1.442695, %v1748_v39  ;;  %v1821_v25 = vpop.permute.xlu1 %1820 }
 0x623   :  { %v3109_v23 = vpop.xlane.xlu0 %1742  ;;  %v1844_v31 = vadd.f32 %v1821_v25, %v3055_v7 }
 0x624   :  { %2412 = vpow2.f32 %v1755_v19  ;;  %v1751_v34 = vsub.f32 %v3082_v48, %v3109_v23 }
 0x625   :  { %2414 = vpow2.f32 %v1759_v8  ;;  %v1850_v42 = vsub.f32 0.0, %v1844_v31 }
 0x626   :  { %v1761_v37 = vmul.f32 1.442695, %v1751_v34  ;;  %v1826_v60 = vpop.permute.xlu1 %1825 }
 0x627   :  { %v1845_v59 = vadd.f32 %v1826_v60, %v3048_v3  ;;  %v1856_v9 = vmul.f32 2.0, %v1850_v42 }
 0x628   :  { %2416 = vpow2.f32 %v1761_v37 }
 0x629   :  { %v1851_v62 = vsub.f32 0.0, %v1845_v59  ;;  %v2152_v15 = vadd.f32 -2.7725887, %v1856_v9 }
 0x62a   :  { %v2409_v32 = vpop.eup %2408 }
 0x62b   :  { %v1765_v51 = vsel %vm3292_vm15, %v2409_v32, 0.0  ;;  %v2411_v53 = vpop.eup %2410  ;;  %v1816_v21 = vpop.permute.xlu0 %1815  ;;  %v1857_v2 = vmul.f32 2.0, %v1851_v62  ;;  %v1868_v44 = vsel %vm3298_vm2, %v2152_v15, -inf  ;;  %vm3306_vm15 = vmmov %vm3286_vm0 }
 0x62c   :  { %1766 = vadd.xlane.f32.xlu1 %v1765_v51  ;;  %v1771_v13 = vsel %vm3293_vm4, %v2411_v53, 0.0  ;;  %v1843_v41 = vadd.f32 %v1816_v21, %v3053_v6  ;;  %vm3307_vm4 = vmmov %vm3286_vm0 }
 0x62d   :  { %vm3312_vm2 = vmmov %vm3286_vm0 }
 0x62e   :  { %v2413_v40 = vpop.eup %2412  ;;  %v1849_v11 = vsub.f32 0.0, %v1843_v41 }
 0x62f   :  { %v1768_v30 = vsel %vm3294_vm6, %v2413_v40, 0.0  ;;  %v2415_v57 = vpop.eup %2414  ;;  %vm3308_vm6 = vmmov %vm3286_vm0 }
 0x630   :  { %1772 = vadd.xlane.f32.xlu1 %v1771_v13  ;;  %1769 = vadd.xlane.f32.xlu0 %v1768_v30  ;;  %v1774_v58 = vsel %vm3295_vm7, %v2415_v57, 0.0  ;;  %v1855_v14 = vmul.f32 2.0, %v1849_v11  ;;  %vm3309_vm7 = vmmov %vm3286_vm0 }
 0x632   :  { %v2417_v29 = vpop.eup %2416  ;;  %v2151_v63 = vadd.f32 -2.7725887, %v1855_v14 }
 0x633   :  { %v1777_v48 = vsel %vm3296_vm9, %v2417_v29, 0.0  ;;  %vm3310_vm9 = vmmov %vm3286_vm0 }
 0x634   :  { %1775 = vadd.xlane.f32.xlu1 %v1774_v58  ;;  %1778 = vadd.xlane.f32.xlu0 %v1777_v48  ;;  %v1867_v5 = vsel %vm3297_vm8, %v2151_v63, -inf  ;;  %vm3311_vm8 = vmmov %vm3286_vm0 }
 0x635   :  { %v1869_v50 = vmax.f32 %v1867_v5, %v1868_v44 }
 0x637   :  { %v1870_v27 = vrot.slane %v1869_v50, 4 }
 0x639   :  { %v1871_v34 = vmax.f32 %v1869_v50, %v1870_v27 }
 0x63b   :  { %v1872_v13 = vrot.slane %v1871_v34, 2 }
 0x63d   :  { %v1873_v29 = vmax.f32 %v1871_v34, %v1872_v13 }
 0x63f   :  { %v1874_v21 = vrot.slane %v1873_v29, 1 }
 0x641   :  { %v3135_v31 = vmax.f32 %v1873_v29, %v1874_v21 }
 0x643   :  { %v1894_v42 = vsub.f32 %v2151_v63, %v3135_v31  ;;  %v1895_v59 = vsub.f32 %v2152_v15, %v3135_v31 }
 0x645   :  { %v1900_v9 = vmul.f32 1.442695, %v1894_v42  ;;  %v1902_v62 = vmul.f32 1.442695, %v1895_v59 }
 0x657   :  { %v3121_v38 = vpop.xlane.xlu1 %1745 }
 0x658   :  { %v1752_v61 = vsub.f32 %v3089_v46, %v3121_v38  ;;  %v2153_v46 = vadd.f32 -2.7725887, %v1857_v2 }
 0x65a   :  { %v1763_v20 = vmul.f32 1.442695, %v1752_v61  ;;  %v1876_v52 = vsel %vm3300_vm12, %v2153_v46, -inf  ;;  %vm3314_vm12 = vmmov %vm3286_vm0 }
 0x65b   :  { %v1831_v22 = vpop.permute.xlu1 %1830 }
 0x65c   :  { %2418 = vpow2.f32 %v1763_v20  ;;  %v1846_v1 = vadd.f32 %v1831_v22, %v3050_v4 }
 0x65d   :  { %2420 = vpow2.f32 %v1900_v9 }
 0x65e   :  { %v1852_v43 = vsub.f32 0.0, %v1846_v1  ;;  %2422 = vpow2.f32 %v1902_v62 }
 0x65f   :  { %v1836_v10 = vpop.permute.xlu1 %1835 }
 0x660   :  { %v1858_v16 = vmul.f32 2.0, %v1852_v43  ;;  %v1847_v47 = vadd.f32 %v1836_v10, %v3058_v17 }
 0x662   :  { %v2154_v45 = vadd.f32 -2.7725887, %v1858_v16  ;;  %v1853_v54 = vsub.f32 0.0, %v1847_v47 }
 0x663   :  { %v1841_v55 = vpop.permute.xlu1 %1840 }
 0x664   :  { %v1877_v18 = vsel %vm3299_vm5, %v2154_v45, -inf  ;;  %v1859_v12 = vmul.f32 2.0, %v1853_v54  ;;  %v1848_v56 = vadd.f32 %v1841_v55, %v3086_v36  ;;  %vm3313_vm5 = vmmov %vm3286_vm0 }
 0x665   :  { %v1878_v33 = vmax.f32 %v1876_v52, %v1877_v18 }
 0x666   :  { %v2419_v24 = vpop.eup %2418  ;;  %v1854_v49 = vsub.f32 0.0, %v1848_v56  ;;  %v2155_v8 = vadd.f32 -2.7725887, %v1859_v12 }
 0x667   :  { %v1780_v39 = vsel %vm3286_vm0, %v2419_v24, 0.0  ;;  %v1879_v32 = vrot.slane %v1878_v33, 4  ;;  %v2421_v16 = vpop.eup %2420 }
 0x668   :  { %v1860_v19 = vmul.f32 2.0, %v1854_v49  ;;  %1781 = vadd.xlane.f32.xlu1 %v1780_v39  ;;  %v1885_v51 = vsel %vm3301_vm10, %v2155_v8, -inf  ;;  %v2423_v47 = vpop.eup %2422  ;;  %v1912_v44 = vsel %vm3303_vm13, %v2421_v16, 0.0  ;;  %vm3315_vm10 = vmmov %vm3286_vm0 }
 0x669   :  { %v1880_v30 = vmax.f32 %v1878_v33, %v1879_v32 }
 0x66a   :  { %v2156_v37 = vadd.f32 -2.7725887, %v1860_v19 }
 0x66b   :  { %v1881_v58 = vrot.slane %v1880_v30, 2 }
 0x66c   :  { %v1886_v53 = vsel %vm3302_vm11, %v2156_v37, -inf  ;;  %vm3316_vm11 = vmmov %vm3286_vm0 }
 0x66d   :  { %v1887_v40 = vmax.f32 %v1885_v51, %v1886_v53  ;;  %v1882_v25 = vmax.f32 %v1880_v30, %v1881_v58 }
 0x66f   :  { %v1888_v57 = vrot.slane %v1887_v40, 4  ;;  %v1883_v60 = vrot.slane %v1882_v25, 1 }
 0x671   :  { %v1889_v48 = vmax.f32 %v1887_v40, %v1888_v57  ;;  %v3139_v14 = vmax.f32 %v1882_v25, %v1883_v60 }
 0x673   :  { %v1890_v41 = vrot.slane %v1889_v48, 2  ;;  %v1896_v20 = vsub.f32 %v2153_v46, %v3139_v14  ;;  %v1897_v22 = vsub.f32 %v2154_v45, %v3139_v14  ;;  %v1913_v46 = vsel %vm3304_vm14, %v2423_v47, 0.0 }
 0x674   :  { %v1914_v54 = vadd.f32 %v1913_v46, %v1912_v44 }
 0x675   :  { %v1891_v11 = vmax.f32 %v1889_v48, %v1890_v41  ;;  %v1904_v2 = vmul.f32 1.442695, %v1896_v20  ;;  %v1906_v43 = vmul.f32 1.442695, %v1897_v22 }
 0x676   :  { %v1915_v24 = vrot.slane %v1914_v54, 4 }
 0x677   :  { %v1892_v61 = vrot.slane %v1891_v11, 1  ;;  %2424 = vpow2.f32 %v1904_v2 }
 0x678   :  { %2426 = vpow2.f32 %v1906_v43  ;;  %v1916_v33 = vadd.f32 %v1915_v24, %v1914_v54 }
 0x679   :  { %v3143_v1 = vmax.f32 %v1891_v11, %v1892_v61 }
 0x67a   :  { %v1917_v19 = vrot.slane %v1916_v33, 2 }
 0x67b   :  { %v1898_v5 = vsub.f32 %v2155_v8, %v3143_v1  ;;  %v1899_v63 = vsub.f32 %v2156_v37, %v3143_v1 }
 0x67c   :  { %v1918_v32 = vadd.f32 %v1917_v19, %v1916_v33 }
 0x67d   :  { %v1908_v15 = vmul.f32 1.442695, %v1898_v5  ;;  %v1910_v10 = vmul.f32 1.442695, %v1899_v63 }
 0x67e   :  { %v1919_v40 = vrot.slane %v1918_v32, 1 }
 0x67f   :  { %2428 = vpow2.f32 %v1908_v15 }
 0x680   :  { %2430 = vpow2.f32 %v1910_v10  ;;  %v1920_v57 = vadd.f32 %v1919_v40, %v1918_v32 }
 0x681   :  { %v2425_v50 = vpop.eup %2424 }
 0x682   :  { %v2427_v45 = vpop.eup %2426  ;;  %v1921_v55 = vsel %vm3305_vm3, %v2425_v50, 0.0  ;;  %2432 = vlog2.f32 %v1920_v57 }
 0x683   :  { %v1922_v18 = vsel %vm3306_vm15, %v2427_v45, 0.0 }
 0x684   :  { %v1923_v52 = vadd.f32 %v1922_v18, %v1921_v55 }
 0x686   :  { %v1924_v39 = vrot.slane %v1923_v52, 4 }
 0x688   :  { %v1925_v34 = vadd.f32 %v1924_v39, %v1923_v52 }
 0x689   :  { %v2429_v12 = vpop.eup %2428 }
 0x68a   :  { %v2431_v56 = vpop.eup %2430  ;;  %v1930_v27 = vsel %vm3307_vm4, %v2429_v12, 0.0  ;;  %v1926_v51 = vrot.slane %v1925_v34, 2 }
 0x68b   :  { %v1931_v49 = vsel %vm3308_vm6, %v2431_v56, 0.0 }
 0x68c   :  { %v1932_v8 = vadd.f32 %v1931_v49, %v1930_v27  ;;  %v1927_v13 = vadd.f32 %v1926_v51, %v1925_v34  ;;  %v2433_v60 = vpop.eup %2432 }
 0x68d   :  { %v1940_v59 = vmul.f32 0.6931472, %v2433_v60 }
 0x68e   :  { %v1933_v37 = vrot.slane %v1932_v8, 4  ;;  %v1928_v29 = vrot.slane %v1927_v13, 1 }
 0x68f   :  { %v1945_v22 = vadd.f32 %v1940_v59, %v3135_v31 }
 0x690   :  { %v1934_v53 = vadd.f32 %v1933_v37, %v1932_v8  ;;  %v1929_v48 = vadd.f32 %v1928_v29, %v1927_v13 }
 0x691   :  { %v1948_v10 = vmul.f32 0.5, %v1945_v22 }
 0x692   :  { %v1935_v30 = vrot.slane %v1934_v53, 2  ;;  %2434 = vlog2.f32 %v1929_v48 }
 0x693   :  { %v3158_v12 = vadd.f32 -2.2894597, %v1948_v10 }
 0x694   :  { %v1936_v58 = vadd.f32 %v1935_v30, %v1934_v53 }
 0x696   :  { %v1937_v21 = vrot.slane %v1936_v58, 1 }
 0x698   :  { %v1938_v25 = vadd.f32 %v1937_v21, %v1936_v58 }
 0x69c   :  { %v2435_v62 = vpop.eup %2434 }
 0x69d   :  { %v1942_v43 = vmul.f32 0.6931472, %v2435_v62 }
 0x69f   :  { %v1946_v46 = vadd.f32 %v1942_v43, %v3139_v14 }
 0x6a1   :  { %v1949_v27 = vmul.f32 0.5, %v1946_v46 }
 0x6a3   :  { %v3165_v32 = vadd.f32 -2.2894597, %v1949_v27 }
 0x6b9   :  { %v1767_v41 = vpop.xlane.xlu1 %1766 }
 0x6ba   :  { %2436 = vlog2.f32 %v1767_v41 }
 0x6bb   :  { %2438 = vlog2.f32 %v1938_v25 }
 0x6bd   :  { %v1773_v11 = vpop.xlane.xlu1 %1772  ;;  %v1770_v42 = vpop.xlane.xlu0 %1769 }
 0x6be   :  { %2440 = vlog2.f32 %v1773_v11 }
 0x6bf   :  { %2442 = vlog2.f32 %v1770_v42 }
 0x6c1   :  { %v1776_v61 = vpop.xlane.xlu1 %1775  ;;  %v1779_v9 = vpop.xlane.xlu0 %1778 }
 0x6c2   :  { %2444 = vlog2.f32 %v1776_v61 }
 0x6c3   :  { %2446 = vlog2.f32 %v1779_v9 }
 0x6c4   :  { %v2437_v20 = vpop.eup %2436 }
 0x6c5   :  { %v1784_v2 = vmul.f32 0.6931472, %v2437_v20  ;;  %v2439_v5 = vpop.eup %2438 }
 0x6c6   :  { %v1944_v45 = vmul.f32 0.6931472, %v2439_v5 }
 0x6c7   :  { %v1795_v63 = vadd.f32 %v1784_v2, %v3097_v26 }
 0x6c8   :  { %v2441_v15 = vpop.eup %2440  ;;  %v1947_v14 = vadd.f32 %v1944_v45, %v3143_v1 }
 0x6c9   :  { %v2443_v16 = vpop.eup %2442  ;;  %v1801_v47 = vmul.f32 0.5, %v1795_v63  ;;  %v1788_v44 = vmul.f32 0.6931472, %v2441_v15 }
 0x6ca   :  { %v1786_v50 = vmul.f32 0.6931472, %v2443_v16  ;;  %v1950_v1 = vmul.f32 0.5, %v1947_v14 }
 0x6cb   :  { %v2145_v54 = vadd.f32 -2.2894597, %v1801_v47  ;;  %v1797_v55 = vadd.f32 %v1788_v44, %v3093_v0 }
 0x6cc   :  { %v2445_v18 = vpop.eup %2444  ;;  %v1796_v31 = vadd.f32 %v1786_v50, %v3105_v35  ;;  %v2159_v25 = vadd.f32 -2.2894597, %v1950_v1 }
 0x6cd   :  { %v2447_v56 = vpop.eup %2446  ;;  %v1803_v24 = vmul.f32 0.5, %v1797_v55  ;;  %v1790_v26 = vmul.f32 0.6931472, %v2445_v18  ;;  %v1990_v52 = vadd.f32 %v2145_v54, %v3053_v6 }
 0x6ce   :  { %v1802_v49 = vmul.f32 0.5, %v1796_v31  ;;  %v1792_v33 = vmul.f32 0.6931472, %v2447_v56  ;;  %v1978_v31 = vsel %vm3314_vm12, %v3158_v12, 0.0  ;;  %v1984_v56 = vsel %vm3286_vm0, %v2159_v25, 0.0 }
 0x6cf   :  { %v2147_v39 = vadd.f32 -2.2894597, %v1803_v24  ;;  %v1798_v8 = vadd.f32 %v1790_v26, %v3101_v28  ;;  %v1996_v0 = vadd.f32 %v3158_v12, %v1990_v52 }
 0x6d0   :  { %v2146_v19 = vadd.f32 -2.2894597, %v1802_v49  ;;  %v1799_v35 = vadd.f32 %v1792_v33, %v3109_v23 }
 0x6d1   :  { %v1804_v34 = vmul.f32 0.5, %v1798_v8  ;;  %v2002_v37 = vsub.f32 0.0, %v1996_v0  ;;  %v1992_v51 = vadd.f32 %v2147_v39, %v3048_v3 }
 0x6d2   :  { %v3168_v6 = vadd.f32 %v2146_v19, %v2145_v54  ;;  %v1805_v53 = vmul.f32 0.5, %v1799_v35  ;;  %v1991_v40 = vadd.f32 %v2146_v19, %v3055_v7 }
 0x6d3   :  { %v2148_v13 = vadd.f32 -2.2894597, %v1804_v34  ;;  %v2008_v30 = vmul.f32 2.0, %v2002_v37  ;;  %v1998_v28 = vadd.f32 %v3165_v32, %v1992_v51  ;;  %v1981_v51 = vsel %vm3316_vm11, %v3165_v32, 0.0 }
 0x6d4   :  { %v2149_v57 = vadd.f32 -2.2894597, %v1805_v53  ;;  %v1997_v29 = vadd.f32 %v3158_v12, %v1991_v40 }
 0x6d5   :  { %v3173_v23 = vadd.f32 %v2148_v13, %v2147_v39  ;;  %v2160_v58 = vadd.f32 -10.124097, %v2008_v30  ;;  %v2004_v48 = vsub.f32 0.0, %v1998_v28  ;;  %v1993_v21 = vadd.f32 %v2148_v13, %v3050_v4 }
 0x6d6   :  { %v2003_v3 = vsub.f32 0.0, %v1997_v29  ;;  %v1994_v41 = vadd.f32 %v2149_v57, %v3058_v17 }
 0x6d7   :  { %v2020_v60 = vmul.f32 1.442695, %v2160_v58  ;;  %v2010_v7 = vmul.f32 2.0, %v2004_v48  ;;  %v1999_v11 = vadd.f32 %v3165_v32, %v1993_v21 }
 0x6d8   :  { %v2009_v42 = vmul.f32 2.0, %v2003_v3  ;;  %v2000_v59 = vadd.f32 %v2159_v25, %v1994_v41 }
 0x6d9   :  { %2448 = vpow2.f32 %v2020_v60  ;;  %v2162_v61 = vadd.f32 -10.124097, %v2010_v7  ;;  %v2005_v9 = vsub.f32 0.0, %v1999_v11 }
 0x6da   :  { %v2161_v62 = vadd.f32 -10.124097, %v2009_v42  ;;  %v2006_v20 = vsub.f32 0.0, %v2000_v59 }
 0x6db   :  { %v2024_v22 = vmul.f32 1.442695, %v2162_v61  ;;  %v2011_v2 = vmul.f32 2.0, %v2005_v9 }
 0x6dc   :  { %v2022_v43 = vmul.f32 1.442695, %v2161_v62  ;;  %v2012_v5 = vmul.f32 2.0, %v2006_v20  ;;  %v1962_v62 = vrot.slane %v3173_v23, 4 }
 0x6dd   :  { %2450 = vpow2.f32 %v2024_v22  ;;  %v2163_v4 = vadd.f32 -10.124097, %v2011_v2 }
 0x6de   :  { %2452 = vpow2.f32 %v2022_v43  ;;  %v2164_v63 = vadd.f32 -10.124097, %v2012_v5  ;;  %v1963_v22 = vadd.f32 %v1962_v62, %v3173_v23 }
 0x6df   :  { %v2026_v17 = vmul.f32 1.442695, %v2163_v4 }
 0x6e0   :  { %v2028_v15 = vmul.f32 1.442695, %v2164_v63  ;;  %v1964_v5 = vrot.slane %v1963_v22, 2 }
 0x6e1   :  { %2454 = vpow2.f32 %v2026_v17 }
 0x6e2   :  { %2456 = vpow2.f32 %v2028_v15  ;;  %v1965_v17 = vadd.f32 %v1964_v5, %v1963_v22 }
 0x6e3   :  { %v2449_v10 = vpop.eup %2448 }
 0x6e4   :  { %v2032_v16 = vsel %vm3309_vm7, %v2449_v10, 0.0 }
 0x6e5   :  { %2033 = vadd.xlane.f32.xlu0 %v2032_v16  ;;  %v1966_v16 = vrot.slane %v1965_v17, 1 }
 0x6e7   :  { %v2451_v47 = vpop.eup %2450 }
 0x6e8   :  { %v2453_v44 = vpop.eup %2452  ;;  %v2038_v46 = vsel %vm3310_vm9, %v2451_v47, 0.0 }
 0x6e9   :  { %2039 = vadd.xlane.f32.xlu0 %v2038_v46  ;;  %v2035_v50 = vsel %vm3311_vm8, %v2453_v44, 0.0  ;;  %v1967_v46 = vadd.f32 %v1966_v16, %v1965_v17 }
 0x6ea   :  { %2036 = vadd.xlane.f32.xlu1 %v2035_v50 }
 0x6eb   :  { %v2455_v45 = vpop.eup %2454 }
 0x6ec   :  { %v2457_v54 = vpop.eup %2456  ;;  %v2041_v55 = vsel %vm3312_vm2, %v2455_v45, 0.0 }
 0x6ed   :  { %v2044_v18 = vsel %vm3313_vm5, %v2457_v54, 0.0 }
 0x6ee   :  { %2042 = vadd.xlane.f32.xlu1 %v2041_v55  ;;  %2045 = vadd.xlane.f32.xlu0 %v2044_v18  ;;  %v1976_v18 = vmul.f32 0.0625, %v1967_v46 }
 0x6f2   :  { %1979 = vadd.xlane.f32.xlu0 %v1978_v31 }
 0x6f5   :  { %v1782_v24 = vpop.xlane.xlu1 %1781 }
 0x6f6   :  { %1985 = vadd.xlane.f32.xlu0 %v1984_v56  ;;  %2458 = vlog2.f32 %v1782_v24 }
 0x700   :  { %v2459_v26 = vpop.eup %2458 }
 0x701   :  { %v1794_v52 = vmul.f32 0.6931472, %v2459_v26 }
 0x703   :  { %v1800_v27 = vadd.f32 %v1794_v52, %v3121_v38  ;;  %v1955_v38 = vrot.slane %v3168_v6, 4  ;;  %v2072_v52 = vsub.f32 0.0, %v1976_v18 }
 0x705   :  { %v1806_v49 = vmul.f32 0.5, %v1800_v27  ;;  %v1956_v53 = vadd.f32 %v1955_v38, %v3168_v6 }
 0x707   :  { %v2150_v33 = vadd.f32 -2.2894597, %v1806_v49  ;;  %v1957_v40 = vrot.slane %v1956_v53, 2 }
 0x709   :  { %v1968_v14 = vadd.f32 %v2150_v33, %v2149_v57  ;;  %v1995_v39 = vadd.f32 %v2150_v33, %v3086_v36  ;;  %v1958_v1 = vadd.f32 %v1957_v40, %v1956_v53 }
 0x70b   :  { %v2001_v8 = vadd.f32 %v2159_v25, %v1995_v39  ;;  %v1959_v57 = vrot.slane %v1958_v1, 1  ;;  %v1969_v43 = vrot.slane %v1968_v14, 4 }
 0x70d   :  { %v2007_v0 = vsub.f32 0.0, %v2001_v8  ;;  %v1960_v21 = vadd.f32 %v1959_v57, %v1958_v1  ;;  %v1970_v63 = vadd.f32 %v1969_v43, %v1968_v14 }
 0x70f   :  { %v2013_v19 = vmul.f32 2.0, %v2007_v0  ;;  %v1975_v32 = vmul.f32 0.0625, %v1960_v21  ;;  %v1971_v10 = vrot.slane %v1970_v63, 2 }
 0x711   :  { %v2165_v35 = vadd.f32 -10.124097, %v2013_v19  ;;  %v2071_v42 = vsub.f32 0.0, %v1975_v32  ;;  %v1972_v44 = vadd.f32 %v1971_v10, %v1970_v63 }
 0x713   :  { %v2030_v12 = vmul.f32 1.442695, %v2165_v35  ;;  %v1973_v54 = vrot.slane %v1972_v44, 1 }
 0x715   :  { %2460 = vpow2.f32 %v2030_v12  ;;  %v1974_v24 = vadd.f32 %v1973_v54, %v1972_v44 }
 0x717   :  { %v1977_v8 = vmul.f32 0.0625, %v1974_v24 }
 0x71f   :  { %v2461_v34 = vpop.eup %2460 }
 0x720   :  { %v2047_v37 = vsel %vm3315_vm10, %v2461_v34, 0.0  ;;  %v2073_v34 = vsub.f32 0.0, %v1977_v8 }
 0x721   :  { %2048 = vadd.xlane.f32.xlu1 %v2047_v37 }
 0x725   :  { %1982 = vadd.xlane.f32.xlu1 %v1981_v51 }
 0x772   :  { %v2034_v36 = vpop.xlane.xlu0 %2033 }
 0x776   :  { %v2040_v13 = vpop.xlane.xlu0 %2039 }
 0x777   :  { %v2037_v30 = vpop.xlane.xlu1 %2036 }
 0x778   :  { %v2050_v28 = vadd.f32 %v2037_v30, %v2034_v36 }
 0x77a   :  { %v2051_v29 = vrot.slane %v2050_v28, 4 }
 0x77b   :  { %v2046_v58 = vpop.xlane.xlu0 %2045  ;;  %v2043_v9 = vpop.xlane.xlu1 %2042 }
 0x77c   :  { %v2052_v48 = vadd.f32 %v2051_v29, %v2050_v28  ;;  %v2057_v20 = vadd.f32 %v2043_v9, %v2040_v13 }
 0x77e   :  { %v2053_v3 = vrot.slane %v2052_v48, 2  ;;  %v2058_v2 = vrot.slane %v2057_v20, 4 }
 0x77f   :  { %v1980_v25 = vpop.xlane.xlu0 %1979 }
 0x780   :  { %v2054_v41 = vadd.f32 %v2053_v3, %v2052_v48  ;;  %v1987_v7 = vmul.f32 0.0625, %v1980_v25  ;;  %v2059_v4 = vadd.f32 %v2058_v2, %v2057_v20 }
 0x782   :  { %v2055_v60 = vrot.slane %v2054_v41, 1  ;;  %v2074_v59 = vsub.f32 %v2071_v42, %v1987_v7  ;;  %v2060_v15 = vrot.slane %v2059_v4, 2 }
 0x783   :  { %v1986_v39 = vpop.xlane.xlu0 %1985 }
 0x784   :  { %v2056_v11 = vadd.f32 %v2055_v60, %v2054_v41  ;;  %v2061_v47 = vadd.f32 %v2060_v15, %v2059_v4  ;;  %v1989_v35 = vmul.f32 0.0625, %v1986_v39 }
 0x786   :  { %v2077_v6 = vmul.f32 0.5, %v2056_v11  ;;  %v2062_v50 = vrot.slane %v2061_v47, 1  ;;  %v2076_v51 = vsub.f32 %v2073_v34, %v1989_v35 }
 0x788   :  { %v2080_v61 = vsub.f32 %v2074_v59, %v2077_v6  ;;  %v2063_v56 = vadd.f32 %v2062_v50, %v2061_v47 }
 0x78a   :  { %2083 = vst.msk [vmem:[%s3207_s3] sm:$0x1] %vm708_vm1, %v2080_v61  ;;  %v2078_v14 = vmul.f32 0.5, %v2063_v56 }
 0x7ae   :  { %v2049_v45 = vpop.xlane.xlu1 %2048 }
 0x7af   :  { %v2064_v55 = vadd.f32 %v2049_v45, %v2046_v58 }
 0x7b1   :  { %v2065_v31 = vrot.slane %v2064_v55, 4 }
 0x7b2   :  { %v1983_v23 = vpop.xlane.xlu1 %1982 }
 0x7b3   :  { %v2066_v26 = vadd.f32 %v2065_v31, %v2064_v55  ;;  %v1988_v27 = vmul.f32 0.0625, %v1983_v23 }
 0x7b5   :  { %v2067_v49 = vrot.slane %v2066_v26, 2  ;;  %v2075_v33 = vsub.f32 %v2072_v52, %v1988_v27 }
 0x7b7   :  { %v2068_v0 = vadd.f32 %v2067_v49, %v2066_v26  ;;  %v2081_v19 = vsub.f32 %v2075_v33, %v2078_v14 }
 0x7b9   :  { %v2069_v12 = vrot.slane %v2068_v0, 1  ;;  %2084 = vst.msk [vmem:[%s3207_s3 + $0x1] sm:$0x1] %vm708_vm1, %v2081_v19 }
 0x7bb   :  { %v2070_v37 = vadd.f32 %v2069_v12, %v2068_v0 }
 0x7bd   :  { %v2079_v38 = vmul.f32 0.5, %v2070_v37 }
 0x7bf   :  { %v2082_v53 = vsub.f32 %v2076_v51, %v2079_v38 }
 0x7c1   :  { %2085 = vst.msk [vmem:[%s3207_s3 + $0x2] sm:$0x1] %vm708_vm1, %v2082_v53 }

</bundles_post_ra>
